<compile_context>
chip_gen: v6e
topology: v6e:2x2x1
jax: 0.10.0
libtpu: 0.0.40
codegen_flags: <defaults>
</compile_context>

<pallas_src>
import functools

import jax
import jax.numpy as jnp
from jax.experimental import pallas as pl
from jax.experimental.pallas import tpu as pltpu


def _lstm_fc_kernel(x_ref, wih_ref, whh_ref, b_ref,
                    w1_ref, b1_ref, w2_ref, b2_ref,
                    out_ref, *, T, B):
    """Single-shot fused LSTM + FC head.

    x_ref  : (T*B, Ip)  f32   time-major rows (row = t*B + b), features zero-padded
    wih_ref: (Ip, 4*Hp) bf16  pre-transposed, gate-blocked, zero-padded
    whh_ref: (Hp, 4*Hp) bf16  pre-transposed, gate-blocked, zero-padded
    b_ref  : (1,  4*Hp) f32   fused b_ih + b_hh, padded lanes = 0
    w1_ref : (Hp, F1p)  bf16  fc_1 weight, pre-transposed, zero-padded
    b1_ref : (1,  F1p)  f32
    w2_ref : (F1p, Cp)  bf16  fc_2 weight, pre-transposed, zero-padded
    b2_ref : (1,  Cp)   f32
    out_ref: (T*B, Cp)  f32   lane-dense output slab
    """
    Hp = whh_ref.shape[0]

    # Recurrent weight loaded once (bf16); reused by every unrolled step.
    whh = whh_ref[...]

    # Input projection for ALL time steps in one bf16 MXU matmul (off the serial
    # chain); bias add hoisted.  Accumulation in f32.
    xg = (jnp.dot(x_ref[...].astype(jnp.bfloat16), wih_ref[...],
                  preferred_element_type=jnp.float32)
          + b_ref[...])                                   # (T*B, 4*Hp) f32

    h = jnp.zeros((B, Hp), jnp.float32)
    c = jnp.zeros((B, Hp), jnp.float32)
    hs = []

    # T is small & static: fully unrolled recurrence, h/c/hs all live in vregs.
    # TODO(synk): explicit pltpu.matmul_push_rhs/acc_lhs/pop to keep whh resident in
    # the MXU weight registers if the compiler re-pushes it each step.
    for t in range(T):
        gates = xg[t * B:(t + 1) * B, :] + jnp.dot(
            h.astype(jnp.bfloat16), whh,
            preferred_element_type=jnp.float32)           # (B, 4*Hp) f32

        # PyTorch nn.LSTM gate order: i, f, g, o -- all slices 128-lane aligned.
        # sigmoid(x) == 0.5*tanh(0.5*x) + 0.5  (1 EUP op per gate instead of 2).
        i_g = 0.5 * jnp.tanh(0.5 * gates[:, 0 * Hp:1 * Hp]) + 0.5
        f_g = 0.5 * jnp.tanh(0.5 * gates[:, 1 * Hp:2 * Hp]) + 0.5
        g_g = jnp.tanh(gates[:, 2 * Hp:3 * Hp])
        o_g = 0.5 * jnp.tanh(0.5 * gates[:, 3 * Hp:4 * Hp]) + 0.5

        c = f_g * c + i_g * g_g                           # f32 gate math (v5e-safe)
        h = o_g * jnp.tanh(c)
        hs.append(h)

    # All T*B hidden rows are only 2 f32 vregs: keep them in registers, no scratch.
    h_all = jnp.concatenate(hs, axis=0)                   # (T*B, Hp) f32

    # FC head batched over all T*B rows; single lane-dense writeback.
    a = jnp.maximum(h_all, 0.0).astype(jnp.bfloat16)                       # (T*B, Hp)
    z1 = jnp.dot(a, w1_ref[...], preferred_element_type=jnp.float32) + b1_ref[...]
    z1 = jnp.maximum(z1, 0.0).astype(jnp.bfloat16)                         # (T*B, F1p)
    z2 = jnp.dot(z1, w2_ref[...], preferred_element_type=jnp.float32) + b2_ref[...]
    out_ref[...] = z2.astype(out_ref.dtype)                                # (T*B, Cp)


def _round_up(n, m):
    return ((n + m - 1) // m) * m


def pack_params(params):
    """One-time weight re-layout: gate-blocked, pre-transposed, zero-padded, bf16.

    Call ONCE at parameter-load time.  `my_lstm_forward` consumes the packed dict,
    so none of these pad/transpose/reshape ops are dispatched on the per-call path.
    Weights are bf16 (MXU-native on v5e/v6e/v7x, f32 accumulation); biases stay f32.
    """
    H = params["w_hh"].shape[1]
    I = params["w_ih"].shape[1]
    F1 = params["w1"].shape[0]
    C = params["w2"].shape[0]
    Hp, Ip, F1p, Cp = (_round_up(d, 128) for d in (H, I, F1, C))

    # w_ih: (4H, I) -> (I, 4, H) -> pad I,H -> (Ip, 4*Hp)
    wih = params["w_ih"].reshape(4, H, I).transpose(2, 0, 1)
    wih = jnp.pad(wih, ((0, Ip - I), (0, 0), (0, Hp - H))).reshape(Ip, 4 * Hp)
    # w_hh: (4H, H) -> (H_in, 4, H_out) -> pad both H dims -> (Hp, 4*Hp)
    whh = params["w_hh"].reshape(4, H, H).transpose(2, 0, 1)
    whh = jnp.pad(whh, ((0, Hp - H), (0, 0), (0, Hp - H))).reshape(Hp, 4 * Hp)
    # fused LSTM bias, padded lanes zero
    b = (params["b_ih"] + params["b_hh"]).reshape(4, H)
    b = jnp.pad(b, ((0, 0), (0, Hp - H))).reshape(1, 4 * Hp)
    # fc_1 / fc_2 pre-transposed; padded rows/cols zero; F1 and C padded to 128 lanes
    w1 = jnp.pad(params["w1"].T, ((0, Hp - H), (0, F1p - F1)))        # (Hp, F1p)
    b1 = jnp.pad(params["b1"], (0, F1p - F1)).reshape(1, F1p)
    w2 = jnp.pad(params["w2"].T, ((0, F1p - F1), (0, Cp - C)))        # (F1p, Cp)
    b2 = jnp.pad(params["b2"], (0, Cp - C)).reshape(1, Cp)

    return {
        "wih": wih.astype(jnp.bfloat16),
        "whh": whh.astype(jnp.bfloat16),
        "b":   b.astype(jnp.float32),
        "w1":  w1.astype(jnp.bfloat16),
        "b1":  b1.astype(jnp.float32),
        "w2":  w2.astype(jnp.bfloat16),
        "b2":  b2.astype(jnp.float32),
    }


@functools.partial(jax.jit, static_argnames=("num_classes",))
def my_lstm_forward(x, packed, *, num_classes):
    """x: (B, T, I) float32, batch_first (PyTorch convention). Returns (B, T, C)."""
    B, T, I = x.shape
    Ip = packed["wih"].shape[0]
    Hp = packed["whh"].shape[0]
    F1p = packed["w1"].shape[1]
    Cp = packed["w2"].shape[1]

    # Time-major, lane-padded 2-D slab: row t*B + b  <->  x[b, t, :].  Cheap layout
    # plumbing on a tiny activation tensor; keeps every in-kernel load lane-dense.
    x2d = jnp.transpose(x, (1, 0, 2)).reshape(T * B, I)
    x2d = jnp.pad(x2d, ((0, 0), (0, Ip - I)))

    full = lambda shape: pl.BlockSpec(shape, lambda i: (0,) * len(shape))

    out2d = pl.pallas_call(
        functools.partial(_lstm_fc_kernel, T=T, B=B),
        out_shape=jax.ShapeDtypeStruct((T * B, Cp), jnp.float32),
        grid_spec=pltpu.PrefetchScalarGridSpec(
            num_scalar_prefetch=0,
            grid=(1,),                                    # single invocation
            in_specs=[
                full((T * B, Ip)),     # x, all time steps (padded features)
                full((Ip, 4 * Hp)),    # W_ih (packed, bf16)
                full((Hp, 4 * Hp)),    # W_hh (packed, bf16)
                full((1, 4 * Hp)),     # fused LSTM bias (f32)
                full((Hp, F1p)),       # fc_1 weight (bf16)
                full((1, F1p)),        # fc_1 bias (f32)
                full((F1p, Cp)),       # fc_2 weight (bf16)
                full((1, Cp)),         # fc_2 bias (f32)
            ],
            out_specs=full((T * B, Cp)),
        ),
        compiler_params=pltpu.CompilerParams(
            # Serial recurrence, single core.  (v7x scaling path: add a leading batch
            # grid axis with core-parallel semantics once B is non-toy.)
            dimension_semantics=("arbitrary",),
        ),
    )(x2d, packed["wih"], packed["whh"], packed["b"],
      packed["w1"], packed["b1"], packed["w2"], packed["b2"])

    # (T*B, Cp) -> (B, T, C)
    return jnp.transpose(out2d.reshape(T, B, Cp), (1, 0, 2))[:, :, :num_classes]


def reference_forward(x, params):
    """Pure-JAX f32 reference of the PyTorch module's forward."""
    B, T, I = x.shape
    H = params["w_hh"].shape[1]

    def step(carry, x_t):
        h, c = carry
        gates = (x_t @ params["w_ih"].T + params["b_ih"]
                 + h @ params["w_hh"].T + params["b_hh"])
        i_g = jax.nn.sigmoid(gates[:, 0 * H:1 * H])
        f_g = jax.nn.sigmoid(gates[:, 1 * H:2 * H])
        g_g = jnp.tanh(gates[:, 2 * H:3 * H])
        o_g = jax.nn.sigmoid(gates[:, 3 * H:4 * H])
        c_new = f_g * c + i_g * g_g
        h_new = o_g * jnp.tanh(c_new)
        return (h_new, c_new), h_new

    h0 = jnp.zeros((B, H), jnp.float32)
    c0 = jnp.zeros((B, H), jnp.float32)
    _, outs = jax.lax.scan(step, (h0, c0), jnp.transpose(x, (1, 0, 2)))
    output = jnp.transpose(outs, (1, 0, 2))                     # (B, T, H)

    out = jnp.maximum(output, 0.0)
    out = out @ params["w1"].T + params["b1"]
    out = jnp.maximum(out, 0.0)
    out = out @ params["w2"].T + params["b2"]
    return out


def init_params(key, input_size, hidden_size, num_classes):
    """Deterministic PyTorch-style uniform init, U(-1/sqrt(fan), 1/sqrt(fan))."""
    ks = jax.random.split(key, 8)
    H, I, C = hidden_size, input_size, num_classes
    s = 1.0 / jnp.sqrt(jnp.float32(H))
    u = lambda k, shape, bound: jax.random.uniform(
        k, shape, jnp.float32, minval=-bound, maxval=bound)
    return {
        "w_ih": u(ks[0], (4 * H, I), s),
        "w_hh": u(ks[1], (4 * H, H), s),
        "b_ih": u(ks[2], (4 * H,), s),
        "b_hh": u(ks[3], (4 * H,), s),
        "w1":   u(ks[4], (64, H), 1.0 / jnp.sqrt(jnp.float32(H))),
        "b1":   u(ks[5], (64,),   1.0 / jnp.sqrt(jnp.float32(H))),
        "w2":   u(ks[6], (C, 64), 1.0 / jnp.sqrt(jnp.float32(64))),
        "b2":   u(ks[7], (C,),    1.0 / jnp.sqrt(jnp.float32(64))),
    }


if __name__ == "__main__":
    hidden_size = 64
    input_size = 27
    num_classes = 27
    batch = 2
    seq_len = 8

    key = jax.random.PRNGKey(0)
    k_params, k_x = jax.random.split(key)
    params = init_params(k_params, input_size, hidden_size, num_classes)
    x = jax.random.normal(k_x, (batch, seq_len, input_size), jnp.float32)

    # One-time packing (outside the per-call jitted path).
    packed = jax.tree_util.tree_map(jax.block_until_ready, pack_params(params))

    out = jax.block_until_ready(my_lstm_forward(x, packed, num_classes=num_classes))
    ref = jax.block_until_ready(reference_forward(x, params))

    assert out.shape == (batch, seq_len, num_classes), out.shape
    # bf16 weights / bf16 matmul inputs (f32 accumulation) give ~1e-3-level
    # deviations vs. the f32 reference, so the tolerance is relaxed accordingly.
    assert jnp.allclose(out, ref, atol=3e-2, rtol=3e-2), "mismatch vs reference"
    print("KERNEL_OK")
</pallas_src>

<mosaic_0001>
module attributes {stable_mosaic.version = 11 : i64} {
  func.func @_lstm_fc_kernel(%arg0: i32, %arg1: memref<16x128xf32, #tpu.memory_space<vmem>>, %arg2: memref<128x512xbf16, #tpu.memory_space<vmem>>, %arg3: memref<128x512xbf16, #tpu.memory_space<vmem>>, %arg4: memref<1x512xf32, #tpu.memory_space<vmem>>, %arg5: memref<128x128xbf16, #tpu.memory_space<vmem>>, %arg6: memref<1x128xf32, #tpu.memory_space<vmem>>, %arg7: memref<128x128xbf16, #tpu.memory_space<vmem>>, %arg8: memref<1x128xf32, #tpu.memory_space<vmem>>, %arg9: memref<16x128xf32, #tpu.memory_space<vmem>>) attributes {dimension_semantics = [#tpu.dimension_semantics<arbitrary>], iteration_bounds = array<i64: 1>, scalar_prefetch = 0 : i64, scratch_operands = 0 : i64, tpu.core_type = #tpu.core_type<tc>, window_params = [{pipeline_mode = #tpu.pipeline_mode<synchronous>, transform_indices = @transform_0, window_bounds = array<i64: 16, 128>}, {pipeline_mode = #tpu.pipeline_mode<synchronous>, transform_indices = @transform_1, window_bounds = array<i64: 128, 512>}, {pipeline_mode = #tpu.pipeline_mode<synchronous>, transform_indices = @transform_2, window_bounds = array<i64: 128, 512>}, {pipeline_mode = #tpu.pipeline_mode<synchronous>, transform_indices = @transform_3, window_bounds = array<i64: 1, 512>}, {pipeline_mode = #tpu.pipeline_mode<synchronous>, transform_indices = @transform_4, window_bounds = array<i64: 128, 128>}, {pipeline_mode = #tpu.pipeline_mode<synchronous>, transform_indices = @transform_5, window_bounds = array<i64: 1, 128>}, {pipeline_mode = #tpu.pipeline_mode<synchronous>, transform_indices = @transform_6, window_bounds = array<i64: 128, 128>}, {pipeline_mode = #tpu.pipeline_mode<synchronous>, transform_indices = @transform_7, window_bounds = array<i64: 1, 128>}, {pipeline_mode = #tpu.pipeline_mode<synchronous>, transform_indices = @transform_8, window_bounds = array<i64: 16, 128>}]} {
    %c0 = arith.constant 0 : index
    %c0_0 = arith.constant 0 : index
    %0 = vector.load %arg3[%c0, %c0_0] : memref<128x512xbf16, #tpu.memory_space<vmem>>, vector<128x512xbf16>
    %c0_1 = arith.constant 0 : index
    %c0_2 = arith.constant 0 : index
    %1 = vector.load %arg1[%c0_1, %c0_2] : memref<16x128xf32, #tpu.memory_space<vmem>>, vector<16x128xf32>
    %2 = arith.truncf %1 : vector<16x128xf32> to vector<16x128xbf16>
    %c0_3 = arith.constant 0 : index
    %c0_4 = arith.constant 0 : index
    %3 = vector.load %arg2[%c0_3, %c0_4] : memref<128x512xbf16, #tpu.memory_space<vmem>>, vector<128x512xbf16>
    %cst = arith.constant dense<0.000000e+00> : vector<16x512xf32>
    %4 = tpu.matmul %2, %3, %cst {dimension_numbers = #tpu.dot_dimension_numbers<[1], [0], [0], [1], [0, 0, 1, 1], [], []>} : vector<16x128xbf16>, vector<128x512xbf16>, vector<16x512xf32> -> vector<16x512xf32>
    %c0_5 = arith.constant 0 : index
    %c0_6 = arith.constant 0 : index
    %5 = vector.load %arg4[%c0_5, %c0_6] : memref<1x512xf32, #tpu.memory_space<vmem>>, vector<1x512xf32>
    %6 = vector.broadcast %5 : vector<1x512xf32> to vector<16x512xf32>
    %7 = arith.addf %4, %6 : vector<16x512xf32>
    %cst_7 = arith.constant 0.000000e+00 : f32
    %8 = vector.broadcast %cst_7 : f32 to vector<2x128xf32>
    %cst_8 = arith.constant 0.000000e+00 : f32
    %9 = vector.broadcast %cst_8 : f32 to vector<2x128xf32>
    %10 = vector.extract_strided_slice %7 {offsets = [0, 0], sizes = [2, 512], strides = [1, 1]} : vector<16x512xf32> to vector<2x512xf32>
    %11 = arith.truncf %8 : vector<2x128xf32> to vector<2x128xbf16>
    %cst_9 = arith.constant dense<0.000000e+00> : vector<2x512xf32>
    %12 = tpu.matmul %11, %0, %cst_9 {dimension_numbers = #tpu.dot_dimension_numbers<[1], [0], [0], [1], [0, 0, 1, 1], [], []>} : vector<2x128xbf16>, vector<128x512xbf16>, vector<2x512xf32> -> vector<2x512xf32>
    %13 = arith.addf %10, %12 : vector<2x512xf32>
    %14 = vector.extract_strided_slice %13 {offsets = [0, 0], sizes = [2, 128], strides = [1, 1]} : vector<2x512xf32> to vector<2x128xf32>
    %cst_10 = arith.constant 5.000000e-01 : f32
    %15 = vector.broadcast %cst_10 : f32 to vector<2x128xf32>
    %16 = arith.mulf %15, %14 : vector<2x128xf32>
    %17 = math.tanh %16 : vector<2x128xf32>
    %cst_11 = arith.constant 5.000000e-01 : f32
    %18 = vector.broadcast %cst_11 : f32 to vector<2x128xf32>
    %19 = arith.mulf %18, %17 : vector<2x128xf32>
    %cst_12 = arith.constant 5.000000e-01 : f32
    %20 = vector.broadcast %cst_12 : f32 to vector<2x128xf32>
    %21 = arith.addf %19, %20 : vector<2x128xf32>
    %22 = vector.extract_strided_slice %13 {offsets = [0, 128], sizes = [2, 128], strides = [1, 1]} : vector<2x512xf32> to vector<2x128xf32>
    %cst_13 = arith.constant 5.000000e-01 : f32
    %23 = vector.broadcast %cst_13 : f32 to vector<2x128xf32>
    %24 = arith.mulf %23, %22 : vector<2x128xf32>
    %25 = math.tanh %24 : vector<2x128xf32>
    %cst_14 = arith.constant 5.000000e-01 : f32
    %26 = vector.broadcast %cst_14 : f32 to vector<2x128xf32>
    %27 = arith.mulf %26, %25 : vector<2x128xf32>
    %cst_15 = arith.constant 5.000000e-01 : f32
    %28 = vector.broadcast %cst_15 : f32 to vector<2x128xf32>
    %29 = arith.addf %27, %28 : vector<2x128xf32>
    %30 = vector.extract_strided_slice %13 {offsets = [0, 256], sizes = [2, 128], strides = [1, 1]} : vector<2x512xf32> to vector<2x128xf32>
    %31 = math.tanh %30 : vector<2x128xf32>
    %32 = vector.extract_strided_slice %13 {offsets = [0, 384], sizes = [2, 128], strides = [1, 1]} : vector<2x512xf32> to vector<2x128xf32>
    %cst_16 = arith.constant 5.000000e-01 : f32
    %33 = vector.broadcast %cst_16 : f32 to vector<2x128xf32>
    %34 = arith.mulf %33, %32 : vector<2x128xf32>
    %35 = math.tanh %34 : vector<2x128xf32>
    %cst_17 = arith.constant 5.000000e-01 : f32
    %36 = vector.broadcast %cst_17 : f32 to vector<2x128xf32>
    %37 = arith.mulf %36, %35 : vector<2x128xf32>
    %cst_18 = arith.constant 5.000000e-01 : f32
    %38 = vector.broadcast %cst_18 : f32 to vector<2x128xf32>
    %39 = arith.addf %37, %38 : vector<2x128xf32>
    %40 = arith.mulf %29, %9 : vector<2x128xf32>
    %41 = arith.mulf %21, %31 : vector<2x128xf32>
    %42 = arith.addf %40, %41 : vector<2x128xf32>
    %43 = math.tanh %42 : vector<2x128xf32>
    %44 = arith.mulf %39, %43 : vector<2x128xf32>
    %45 = vector.extract_strided_slice %7 {offsets = [2, 0], sizes = [2, 512], strides = [1, 1]} : vector<16x512xf32> to vector<2x512xf32>
    %46 = arith.truncf %44 : vector<2x128xf32> to vector<2x128xbf16>
    %cst_19 = arith.constant dense<0.000000e+00> : vector<2x512xf32>
    %47 = tpu.matmul %46, %0, %cst_19 {dimension_numbers = #tpu.dot_dimension_numbers<[1], [0], [0], [1], [0, 0, 1, 1], [], []>} : vector<2x128xbf16>, vector<128x512xbf16>, vector<2x512xf32> -> vector<2x512xf32>
    %48 = arith.addf %45, %47 : vector<2x512xf32>
    %49 = vector.extract_strided_slice %48 {offsets = [0, 0], sizes = [2, 128], strides = [1, 1]} : vector<2x512xf32> to vector<2x128xf32>
    %cst_20 = arith.constant 5.000000e-01 : f32
    %50 = vector.broadcast %cst_20 : f32 to vector<2x128xf32>
    %51 = arith.mulf %50, %49 : vector<2x128xf32>
    %52 = math.tanh %51 : vector<2x128xf32>
    %cst_21 = arith.constant 5.000000e-01 : f32
    %53 = vector.broadcast %cst_21 : f32 to vector<2x128xf32>
    %54 = arith.mulf %53, %52 : vector<2x128xf32>
    %cst_22 = arith.constant 5.000000e-01 : f32
    %55 = vector.broadcast %cst_22 : f32 to vector<2x128xf32>
    %56 = arith.addf %54, %55 : vector<2x128xf32>
    %57 = vector.extract_strided_slice %48 {offsets = [0, 128], sizes = [2, 128], strides = [1, 1]} : vector<2x512xf32> to vector<2x128xf32>
    %cst_23 = arith.constant 5.000000e-01 : f32
    %58 = vector.broadcast %cst_23 : f32 to vector<2x128xf32>
    %59 = arith.mulf %58, %57 : vector<2x128xf32>
    %60 = math.tanh %59 : vector<2x128xf32>
    %cst_24 = arith.constant 5.000000e-01 : f32
    %61 = vector.broadcast %cst_24 : f32 to vector<2x128xf32>
    %62 = arith.mulf %61, %60 : vector<2x128xf32>
    %cst_25 = arith.constant 5.000000e-01 : f32
    %63 = vector.broadcast %cst_25 : f32 to vector<2x128xf32>
    %64 = arith.addf %62, %63 : vector<2x128xf32>
    %65 = vector.extract_strided_slice %48 {offsets = [0, 256], sizes = [2, 128], strides = [1, 1]} : vector<2x512xf32> to vector<2x128xf32>
    %66 = math.tanh %65 : vector<2x128xf32>
    %67 = vector.extract_strided_slice %48 {offsets = [0, 384], sizes = [2, 128], strides = [1, 1]} : vector<2x512xf32> to vector<2x128xf32>
    %cst_26 = arith.constant 5.000000e-01 : f32
    %68 = vector.broadcast %cst_26 : f32 to vector<2x128xf32>
    %69 = arith.mulf %68, %67 : vector<2x128xf32>
    %70 = math.tanh %69 : vector<2x128xf32>
    %cst_27 = arith.constant 5.000000e-01 : f32
    %71 = vector.broadcast %cst_27 : f32 to vector<2x128xf32>
    %72 = arith.mulf %71, %70 : vector<2x128xf32>
    %cst_28 = arith.constant 5.000000e-01 : f32
    %73 = vector.broadcast %cst_28 : f32 to vector<2x128xf32>
    %74 = arith.addf %72, %73 : vector<2x128xf32>
    %75 = arith.mulf %64, %42 : vector<2x128xf32>
    %76 = arith.mulf %56, %66 : vector<2x128xf32>
    %77 = arith.addf %75, %76 : vector<2x128xf32>
    %78 = math.tanh %77 : vector<2x128xf32>
    %79 = arith.mulf %74, %78 : vector<2x128xf32>
    %80 = vector.extract_strided_slice %7 {offsets = [4, 0], sizes = [2, 512], strides = [1, 1]} : vector<16x512xf32> to vector<2x512xf32>
    %81 = arith.truncf %79 : vector<2x128xf32> to vector<2x128xbf16>
    %cst_29 = arith.constant dense<0.000000e+00> : vector<2x512xf32>
    %82 = tpu.matmul %81, %0, %cst_29 {dimension_numbers = #tpu.dot_dimension_numbers<[1], [0], [0], [1], [0, 0, 1, 1], [], []>} : vector<2x128xbf16>, vector<128x512xbf16>, vector<2x512xf32> -> vector<2x512xf32>
    %83 = arith.addf %80, %82 : vector<2x512xf32>
    %84 = vector.extract_strided_slice %83 {offsets = [0, 0], sizes = [2, 128], strides = [1, 1]} : vector<2x512xf32> to vector<2x128xf32>
    %cst_30 = arith.constant 5.000000e-01 : f32
    %85 = vector.broadcast %cst_30 : f32 to vector<2x128xf32>
    %86 = arith.mulf %85, %84 : vector<2x128xf32>
    %87 = math.tanh %86 : vector<2x128xf32>
    %cst_31 = arith.constant 5.000000e-01 : f32
    %88 = vector.broadcast %cst_31 : f32 to vector<2x128xf32>
    %89 = arith.mulf %88, %87 : vector<2x128xf32>
    %cst_32 = arith.constant 5.000000e-01 : f32
    %90 = vector.broadcast %cst_32 : f32 to vector<2x128xf32>
    %91 = arith.addf %89, %90 : vector<2x128xf32>
    %92 = vector.extract_strided_slice %83 {offsets = [0, 128], sizes = [2, 128], strides = [1, 1]} : vector<2x512xf32> to vector<2x128xf32>
    %cst_33 = arith.constant 5.000000e-01 : f32
    %93 = vector.broadcast %cst_33 : f32 to vector<2x128xf32>
    %94 = arith.mulf %93, %92 : vector<2x128xf32>
    %95 = math.tanh %94 : vector<2x128xf32>
    %cst_34 = arith.constant 5.000000e-01 : f32
    %96 = vector.broadcast %cst_34 : f32 to vector<2x128xf32>
    %97 = arith.mulf %96, %95 : vector<2x128xf32>
    %cst_35 = arith.constant 5.000000e-01 : f32
    %98 = vector.broadcast %cst_35 : f32 to vector<2x128xf32>
    %99 = arith.addf %97, %98 : vector<2x128xf32>
    %100 = vector.extract_strided_slice %83 {offsets = [0, 256], sizes = [2, 128], strides = [1, 1]} : vector<2x512xf32> to vector<2x128xf32>
    %101 = math.tanh %100 : vector<2x128xf32>
    %102 = vector.extract_strided_slice %83 {offsets = [0, 384], sizes = [2, 128], strides = [1, 1]} : vector<2x512xf32> to vector<2x128xf32>
    %cst_36 = arith.constant 5.000000e-01 : f32
    %103 = vector.broadcast %cst_36 : f32 to vector<2x128xf32>
    %104 = arith.mulf %103, %102 : vector<2x128xf32>
    %105 = math.tanh %104 : vector<2x128xf32>
    %cst_37 = arith.constant 5.000000e-01 : f32
    %106 = vector.broadcast %cst_37 : f32 to vector<2x128xf32>
    %107 = arith.mulf %106, %105 : vector<2x128xf32>
    %cst_38 = arith.constant 5.000000e-01 : f32
    %108 = vector.broadcast %cst_38 : f32 to vector<2x128xf32>
    %109 = arith.addf %107, %108 : vector<2x128xf32>
    %110 = arith.mulf %99, %77 : vector<2x128xf32>
    %111 = arith.mulf %91, %101 : vector<2x128xf32>
    %112 = arith.addf %110, %111 : vector<2x128xf32>
    %113 = math.tanh %112 : vector<2x128xf32>
    %114 = arith.mulf %109, %113 : vector<2x128xf32>
    %115 = vector.extract_strided_slice %7 {offsets = [6, 0], sizes = [2, 512], strides = [1, 1]} : vector<16x512xf32> to vector<2x512xf32>
    %116 = arith.truncf %114 : vector<2x128xf32> to vector<2x128xbf16>
    %cst_39 = arith.constant dense<0.000000e+00> : vector<2x512xf32>
    %117 = tpu.matmul %116, %0, %cst_39 {dimension_numbers = #tpu.dot_dimension_numbers<[1], [0], [0], [1], [0, 0, 1, 1], [], []>} : vector<2x128xbf16>, vector<128x512xbf16>, vector<2x512xf32> -> vector<2x512xf32>
    %118 = arith.addf %115, %117 : vector<2x512xf32>
    %119 = vector.extract_strided_slice %118 {offsets = [0, 0], sizes = [2, 128], strides = [1, 1]} : vector<2x512xf32> to vector<2x128xf32>
    %cst_40 = arith.constant 5.000000e-01 : f32
    %120 = vector.broadcast %cst_40 : f32 to vector<2x128xf32>
    %121 = arith.mulf %120, %119 : vector<2x128xf32>
    %122 = math.tanh %121 : vector<2x128xf32>
    %cst_41 = arith.constant 5.000000e-01 : f32
    %123 = vector.broadcast %cst_41 : f32 to vector<2x128xf32>
    %124 = arith.mulf %123, %122 : vector<2x128xf32>
    %cst_42 = arith.constant 5.000000e-01 : f32
    %125 = vector.broadcast %cst_42 : f32 to vector<2x128xf32>
    %126 = arith.addf %124, %125 : vector<2x128xf32>
    %127 = vector.extract_strided_slice %118 {offsets = [0, 128], sizes = [2, 128], strides = [1, 1]} : vector<2x512xf32> to vector<2x128xf32>
    %cst_43 = arith.constant 5.000000e-01 : f32
    %128 = vector.broadcast %cst_43 : f32 to vector<2x128xf32>
    %129 = arith.mulf %128, %127 : vector<2x128xf32>
    %130 = math.tanh %129 : vector<2x128xf32>
    %cst_44 = arith.constant 5.000000e-01 : f32
    %131 = vector.broadcast %cst_44 : f32 to vector<2x128xf32>
    %132 = arith.mulf %131, %130 : vector<2x128xf32>
    %cst_45 = arith.constant 5.000000e-01 : f32
    %133 = vector.broadcast %cst_45 : f32 to vector<2x128xf32>
    %134 = arith.addf %132, %133 : vector<2x128xf32>
    %135 = vector.extract_strided_slice %118 {offsets = [0, 256], sizes = [2, 128], strides = [1, 1]} : vector<2x512xf32> to vector<2x128xf32>
    %136 = math.tanh %135 : vector<2x128xf32>
    %137 = vector.extract_strided_slice %118 {offsets = [0, 384], sizes = [2, 128], strides = [1, 1]} : vector<2x512xf32> to vector<2x128xf32>
    %cst_46 = arith.constant 5.000000e-01 : f32
    %138 = vector.broadcast %cst_46 : f32 to vector<2x128xf32>
    %139 = arith.mulf %138, %137 : vector<2x128xf32>
    %140 = math.tanh %139 : vector<2x128xf32>
    %cst_47 = arith.constant 5.000000e-01 : f32
    %141 = vector.broadcast %cst_47 : f32 to vector<2x128xf32>
    %142 = arith.mulf %141, %140 : vector<2x128xf32>
    %cst_48 = arith.constant 5.000000e-01 : f32
    %143 = vector.broadcast %cst_48 : f32 to vector<2x128xf32>
    %144 = arith.addf %142, %143 : vector<2x128xf32>
    %145 = arith.mulf %134, %112 : vector<2x128xf32>
    %146 = arith.mulf %126, %136 : vector<2x128xf32>
    %147 = arith.addf %145, %146 : vector<2x128xf32>
    %148 = math.tanh %147 : vector<2x128xf32>
    %149 = arith.mulf %144, %148 : vector<2x128xf32>
    %150 = vector.extract_strided_slice %7 {offsets = [8, 0], sizes = [2, 512], strides = [1, 1]} : vector<16x512xf32> to vector<2x512xf32>
    %151 = arith.truncf %149 : vector<2x128xf32> to vector<2x128xbf16>
    %cst_49 = arith.constant dense<0.000000e+00> : vector<2x512xf32>
    %152 = tpu.matmul %151, %0, %cst_49 {dimension_numbers = #tpu.dot_dimension_numbers<[1], [0], [0], [1], [0, 0, 1, 1], [], []>} : vector<2x128xbf16>, vector<128x512xbf16>, vector<2x512xf32> -> vector<2x512xf32>
    %153 = arith.addf %150, %152 : vector<2x512xf32>
    %154 = vector.extract_strided_slice %153 {offsets = [0, 0], sizes = [2, 128], strides = [1, 1]} : vector<2x512xf32> to vector<2x128xf32>
    %cst_50 = arith.constant 5.000000e-01 : f32
    %155 = vector.broadcast %cst_50 : f32 to vector<2x128xf32>
    %156 = arith.mulf %155, %154 : vector<2x128xf32>
    %157 = math.tanh %156 : vector<2x128xf32>
    %cst_51 = arith.constant 5.000000e-01 : f32
    %158 = vector.broadcast %cst_51 : f32 to vector<2x128xf32>
    %159 = arith.mulf %158, %157 : vector<2x128xf32>
    %cst_52 = arith.constant 5.000000e-01 : f32
    %160 = vector.broadcast %cst_52 : f32 to vector<2x128xf32>
    %161 = arith.addf %159, %160 : vector<2x128xf32>
    %162 = vector.extract_strided_slice %153 {offsets = [0, 128], sizes = [2, 128], strides = [1, 1]} : vector<2x512xf32> to vector<2x128xf32>
    %cst_53 = arith.constant 5.000000e-01 : f32
    %163 = vector.broadcast %cst_53 : f32 to vector<2x128xf32>
    %164 = arith.mulf %163, %162 : vector<2x128xf32>
    %165 = math.tanh %164 : vector<2x128xf32>
    %cst_54 = arith.constant 5.000000e-01 : f32
    %166 = vector.broadcast %cst_54 : f32 to vector<2x128xf32>
    %167 = arith.mulf %166, %165 : vector<2x128xf32>
    %cst_55 = arith.constant 5.000000e-01 : f32
    %168 = vector.broadcast %cst_55 : f32 to vector<2x128xf32>
    %169 = arith.addf %167, %168 : vector<2x128xf32>
    %170 = vector.extract_strided_slice %153 {offsets = [0, 256], sizes = [2, 128], strides = [1, 1]} : vector<2x512xf32> to vector<2x128xf32>
    %171 = math.tanh %170 : vector<2x128xf32>
    %172 = vector.extract_strided_slice %153 {offsets = [0, 384], sizes = [2, 128], strides = [1, 1]} : vector<2x512xf32> to vector<2x128xf32>
    %cst_56 = arith.constant 5.000000e-01 : f32
    %173 = vector.broadcast %cst_56 : f32 to vector<2x128xf32>
    %174 = arith.mulf %173, %172 : vector<2x128xf32>
    %175 = math.tanh %174 : vector<2x128xf32>
    %cst_57 = arith.constant 5.000000e-01 : f32
    %176 = vector.broadcast %cst_57 : f32 to vector<2x128xf32>
    %177 = arith.mulf %176, %175 : vector<2x128xf32>
    %cst_58 = arith.constant 5.000000e-01 : f32
    %178 = vector.broadcast %cst_58 : f32 to vector<2x128xf32>
    %179 = arith.addf %177, %178 : vector<2x128xf32>
    %180 = arith.mulf %169, %147 : vector<2x128xf32>
    %181 = arith.mulf %161, %171 : vector<2x128xf32>
    %182 = arith.addf %180, %181 : vector<2x128xf32>
    %183 = math.tanh %182 : vector<2x128xf32>
    %184 = arith.mulf %179, %183 : vector<2x128xf32>
    %185 = vector.extract_strided_slice %7 {offsets = [10, 0], sizes = [2, 512], strides = [1, 1]} : vector<16x512xf32> to vector<2x512xf32>
    %186 = arith.truncf %184 : vector<2x128xf32> to vector<2x128xbf16>
    %cst_59 = arith.constant dense<0.000000e+00> : vector<2x512xf32>
    %187 = tpu.matmul %186, %0, %cst_59 {dimension_numbers = #tpu.dot_dimension_numbers<[1], [0], [0], [1], [0, 0, 1, 1], [], []>} : vector<2x128xbf16>, vector<128x512xbf16>, vector<2x512xf32> -> vector<2x512xf32>
    %188 = arith.addf %185, %187 : vector<2x512xf32>
    %189 = vector.extract_strided_slice %188 {offsets = [0, 0], sizes = [2, 128], strides = [1, 1]} : vector<2x512xf32> to vector<2x128xf32>
    %cst_60 = arith.constant 5.000000e-01 : f32
    %190 = vector.broadcast %cst_60 : f32 to vector<2x128xf32>
    %191 = arith.mulf %190, %189 : vector<2x128xf32>
    %192 = math.tanh %191 : vector<2x128xf32>
    %cst_61 = arith.constant 5.000000e-01 : f32
    %193 = vector.broadcast %cst_61 : f32 to vector<2x128xf32>
    %194 = arith.mulf %193, %192 : vector<2x128xf32>
    %cst_62 = arith.constant 5.000000e-01 : f32
    %195 = vector.broadcast %cst_62 : f32 to vector<2x128xf32>
    %196 = arith.addf %194, %195 : vector<2x128xf32>
    %197 = vector.extract_strided_slice %188 {offsets = [0, 128], sizes = [2, 128], strides = [1, 1]} : vector<2x512xf32> to vector<2x128xf32>
    %cst_63 = arith.constant 5.000000e-01 : f32
    %198 = vector.broadcast %cst_63 : f32 to vector<2x128xf32>
    %199 = arith.mulf %198, %197 : vector<2x128xf32>
    %200 = math.tanh %199 : vector<2x128xf32>
    %cst_64 = arith.constant 5.000000e-01 : f32
    %201 = vector.broadcast %cst_64 : f32 to vector<2x128xf32>
    %202 = arith.mulf %201, %200 : vector<2x128xf32>
    %cst_65 = arith.constant 5.000000e-01 : f32
    %203 = vector.broadcast %cst_65 : f32 to vector<2x128xf32>
    %204 = arith.addf %202, %203 : vector<2x128xf32>
    %205 = vector.extract_strided_slice %188 {offsets = [0, 256], sizes = [2, 128], strides = [1, 1]} : vector<2x512xf32> to vector<2x128xf32>
    %206 = math.tanh %205 : vector<2x128xf32>
    %207 = vector.extract_strided_slice %188 {offsets = [0, 384], sizes = [2, 128], strides = [1, 1]} : vector<2x512xf32> to vector<2x128xf32>
    %cst_66 = arith.constant 5.000000e-01 : f32
    %208 = vector.broadcast %cst_66 : f32 to vector<2x128xf32>
    %209 = arith.mulf %208, %207 : vector<2x128xf32>
    %210 = math.tanh %209 : vector<2x128xf32>
    %cst_67 = arith.constant 5.000000e-01 : f32
    %211 = vector.broadcast %cst_67 : f32 to vector<2x128xf32>
    %212 = arith.mulf %211, %210 : vector<2x128xf32>
    %cst_68 = arith.constant 5.000000e-01 : f32
    %213 = vector.broadcast %cst_68 : f32 to vector<2x128xf32>
    %214 = arith.addf %212, %213 : vector<2x128xf32>
    %215 = arith.mulf %204, %182 : vector<2x128xf32>
    %216 = arith.mulf %196, %206 : vector<2x128xf32>
    %217 = arith.addf %215, %216 : vector<2x128xf32>
    %218 = math.tanh %217 : vector<2x128xf32>
    %219 = arith.mulf %214, %218 : vector<2x128xf32>
    %220 = vector.extract_strided_slice %7 {offsets = [12, 0], sizes = [2, 512], strides = [1, 1]} : vector<16x512xf32> to vector<2x512xf32>
    %221 = arith.truncf %219 : vector<2x128xf32> to vector<2x128xbf16>
    %cst_69 = arith.constant dense<0.000000e+00> : vector<2x512xf32>
    %222 = tpu.matmul %221, %0, %cst_69 {dimension_numbers = #tpu.dot_dimension_numbers<[1], [0], [0], [1], [0, 0, 1, 1], [], []>} : vector<2x128xbf16>, vector<128x512xbf16>, vector<2x512xf32> -> vector<2x512xf32>
    %223 = arith.addf %220, %222 : vector<2x512xf32>
    %224 = vector.extract_strided_slice %223 {offsets = [0, 0], sizes = [2, 128], strides = [1, 1]} : vector<2x512xf32> to vector<2x128xf32>
    %cst_70 = arith.constant 5.000000e-01 : f32
    %225 = vector.broadcast %cst_70 : f32 to vector<2x128xf32>
    %226 = arith.mulf %225, %224 : vector<2x128xf32>
    %227 = math.tanh %226 : vector<2x128xf32>
    %cst_71 = arith.constant 5.000000e-01 : f32
    %228 = vector.broadcast %cst_71 : f32 to vector<2x128xf32>
    %229 = arith.mulf %228, %227 : vector<2x128xf32>
    %cst_72 = arith.constant 5.000000e-01 : f32
    %230 = vector.broadcast %cst_72 : f32 to vector<2x128xf32>
    %231 = arith.addf %229, %230 : vector<2x128xf32>
    %232 = vector.extract_strided_slice %223 {offsets = [0, 128], sizes = [2, 128], strides = [1, 1]} : vector<2x512xf32> to vector<2x128xf32>
    %cst_73 = arith.constant 5.000000e-01 : f32
    %233 = vector.broadcast %cst_73 : f32 to vector<2x128xf32>
    %234 = arith.mulf %233, %232 : vector<2x128xf32>
    %235 = math.tanh %234 : vector<2x128xf32>
    %cst_74 = arith.constant 5.000000e-01 : f32
    %236 = vector.broadcast %cst_74 : f32 to vector<2x128xf32>
    %237 = arith.mulf %236, %235 : vector<2x128xf32>
    %cst_75 = arith.constant 5.000000e-01 : f32
    %238 = vector.broadcast %cst_75 : f32 to vector<2x128xf32>
    %239 = arith.addf %237, %238 : vector<2x128xf32>
    %240 = vector.extract_strided_slice %223 {offsets = [0, 256], sizes = [2, 128], strides = [1, 1]} : vector<2x512xf32> to vector<2x128xf32>
    %241 = math.tanh %240 : vector<2x128xf32>
    %242 = vector.extract_strided_slice %223 {offsets = [0, 384], sizes = [2, 128], strides = [1, 1]} : vector<2x512xf32> to vector<2x128xf32>
    %cst_76 = arith.constant 5.000000e-01 : f32
    %243 = vector.broadcast %cst_76 : f32 to vector<2x128xf32>
    %244 = arith.mulf %243, %242 : vector<2x128xf32>
    %245 = math.tanh %244 : vector<2x128xf32>
    %cst_77 = arith.constant 5.000000e-01 : f32
    %246 = vector.broadcast %cst_77 : f32 to vector<2x128xf32>
    %247 = arith.mulf %246, %245 : vector<2x128xf32>
    %cst_78 = arith.constant 5.000000e-01 : f32
    %248 = vector.broadcast %cst_78 : f32 to vector<2x128xf32>
    %249 = arith.addf %247, %248 : vector<2x128xf32>
    %250 = arith.mulf %239, %217 : vector<2x128xf32>
    %251 = arith.mulf %231, %241 : vector<2x128xf32>
    %252 = arith.addf %250, %251 : vector<2x128xf32>
    %253 = math.tanh %252 : vector<2x128xf32>
    %254 = arith.mulf %249, %253 : vector<2x128xf32>
    %255 = vector.extract_strided_slice %7 {offsets = [14, 0], sizes = [2, 512], strides = [1, 1]} : vector<16x512xf32> to vector<2x512xf32>
    %256 = arith.truncf %254 : vector<2x128xf32> to vector<2x128xbf16>
    %cst_79 = arith.constant dense<0.000000e+00> : vector<2x512xf32>
    %257 = tpu.matmul %256, %0, %cst_79 {dimension_numbers = #tpu.dot_dimension_numbers<[1], [0], [0], [1], [0, 0, 1, 1], [], []>} : vector<2x128xbf16>, vector<128x512xbf16>, vector<2x512xf32> -> vector<2x512xf32>
    %258 = arith.addf %255, %257 : vector<2x512xf32>
    %259 = vector.extract_strided_slice %258 {offsets = [0, 0], sizes = [2, 128], strides = [1, 1]} : vector<2x512xf32> to vector<2x128xf32>
    %cst_80 = arith.constant 5.000000e-01 : f32
    %260 = vector.broadcast %cst_80 : f32 to vector<2x128xf32>
    %261 = arith.mulf %260, %259 : vector<2x128xf32>
    %262 = math.tanh %261 : vector<2x128xf32>
    %cst_81 = arith.constant 5.000000e-01 : f32
    %263 = vector.broadcast %cst_81 : f32 to vector<2x128xf32>
    %264 = arith.mulf %263, %262 : vector<2x128xf32>
    %cst_82 = arith.constant 5.000000e-01 : f32
    %265 = vector.broadcast %cst_82 : f32 to vector<2x128xf32>
    %266 = arith.addf %264, %265 : vector<2x128xf32>
    %267 = vector.extract_strided_slice %258 {offsets = [0, 128], sizes = [2, 128], strides = [1, 1]} : vector<2x512xf32> to vector<2x128xf32>
    %cst_83 = arith.constant 5.000000e-01 : f32
    %268 = vector.broadcast %cst_83 : f32 to vector<2x128xf32>
    %269 = arith.mulf %268, %267 : vector<2x128xf32>
    %270 = math.tanh %269 : vector<2x128xf32>
    %cst_84 = arith.constant 5.000000e-01 : f32
    %271 = vector.broadcast %cst_84 : f32 to vector<2x128xf32>
    %272 = arith.mulf %271, %270 : vector<2x128xf32>
    %cst_85 = arith.constant 5.000000e-01 : f32
    %273 = vector.broadcast %cst_85 : f32 to vector<2x128xf32>
    %274 = arith.addf %272, %273 : vector<2x128xf32>
    %275 = vector.extract_strided_slice %258 {offsets = [0, 256], sizes = [2, 128], strides = [1, 1]} : vector<2x512xf32> to vector<2x128xf32>
    %276 = math.tanh %275 : vector<2x128xf32>
    %277 = vector.extract_strided_slice %258 {offsets = [0, 384], sizes = [2, 128], strides = [1, 1]} : vector<2x512xf32> to vector<2x128xf32>
    %cst_86 = arith.constant 5.000000e-01 : f32
    %278 = vector.broadcast %cst_86 : f32 to vector<2x128xf32>
    %279 = arith.mulf %278, %277 : vector<2x128xf32>
    %280 = math.tanh %279 : vector<2x128xf32>
    %cst_87 = arith.constant 5.000000e-01 : f32
    %281 = vector.broadcast %cst_87 : f32 to vector<2x128xf32>
    %282 = arith.mulf %281, %280 : vector<2x128xf32>
    %cst_88 = arith.constant 5.000000e-01 : f32
    %283 = vector.broadcast %cst_88 : f32 to vector<2x128xf32>
    %284 = arith.addf %282, %283 : vector<2x128xf32>
    %285 = arith.mulf %274, %252 : vector<2x128xf32>
    %286 = arith.mulf %266, %276 : vector<2x128xf32>
    %287 = arith.addf %285, %286 : vector<2x128xf32>
    %288 = math.tanh %287 : vector<2x128xf32>
    %289 = arith.mulf %284, %288 : vector<2x128xf32>
    %290 = tpu.concatenate %44, %79, %114, %149, %184, %219, %254, %289 in 0 : vector<2x128xf32>, vector<2x128xf32>, vector<2x128xf32>, vector<2x128xf32>, vector<2x128xf32>, vector<2x128xf32>, vector<2x128xf32>, vector<2x128xf32> -> vector<16x128xf32>
    %cst_89 = arith.constant 0.000000e+00 : f32
    %291 = vector.broadcast %cst_89 : f32 to vector<16x128xf32>
    %292 = arith.maximumf %290, %291 : vector<16x128xf32>
    %293 = arith.truncf %292 : vector<16x128xf32> to vector<16x128xbf16>
    %c0_90 = arith.constant 0 : index
    %c0_91 = arith.constant 0 : index
    %294 = vector.load %arg5[%c0_90, %c0_91] : memref<128x128xbf16, #tpu.memory_space<vmem>>, vector<128x128xbf16>
    %cst_92 = arith.constant dense<0.000000e+00> : vector<16x128xf32>
    %295 = tpu.matmul %293, %294, %cst_92 {dimension_numbers = #tpu.dot_dimension_numbers<[1], [0], [0], [1], [0, 0, 1, 1], [], []>} : vector<16x128xbf16>, vector<128x128xbf16>, vector<16x128xf32> -> vector<16x128xf32>
    %c0_93 = arith.constant 0 : index
    %c0_94 = arith.constant 0 : index
    %296 = vector.load %arg6[%c0_93, %c0_94] : memref<1x128xf32, #tpu.memory_space<vmem>>, vector<1x128xf32>
    %297 = vector.broadcast %296 : vector<1x128xf32> to vector<16x128xf32>
    %298 = arith.addf %295, %297 : vector<16x128xf32>
    %cst_95 = arith.constant 0.000000e+00 : f32
    %299 = vector.broadcast %cst_95 : f32 to vector<16x128xf32>
    %300 = arith.maximumf %298, %299 : vector<16x128xf32>
    %301 = arith.truncf %300 : vector<16x128xf32> to vector<16x128xbf16>
    %c0_96 = arith.constant 0 : index
    %c0_97 = arith.constant 0 : index
    %302 = vector.load %arg7[%c0_96, %c0_97] : memref<128x128xbf16, #tpu.memory_space<vmem>>, vector<128x128xbf16>
    %cst_98 = arith.constant dense<0.000000e+00> : vector<16x128xf32>
    %303 = tpu.matmul %301, %302, %cst_98 {dimension_numbers = #tpu.dot_dimension_numbers<[1], [0], [0], [1], [0, 0, 1, 1], [], []>} : vector<16x128xbf16>, vector<128x128xbf16>, vector<16x128xf32> -> vector<16x128xf32>
    %c0_99 = arith.constant 0 : index
    %c0_100 = arith.constant 0 : index
    %304 = vector.load %arg8[%c0_99, %c0_100] : memref<1x128xf32, #tpu.memory_space<vmem>>, vector<1x128xf32>
    %305 = vector.broadcast %304 : vector<1x128xf32> to vector<16x128xf32>
    %306 = arith.addf %303, %305 : vector<16x128xf32>
    %c0_101 = arith.constant 0 : index
    %c0_102 = arith.constant 0 : index
    %307 = vector.load %arg9[%c0_101, %c0_102] : memref<16x128xf32, #tpu.memory_space<vmem>>, vector<16x128xf32>
    tpu.vector_store %arg9[%c0_101, %c0_102], %306 {strides = array<i32>} : memref<16x128xf32, #tpu.memory_space<vmem>>, vector<16x128xf32>,
    return
  }
  func.func @transform_0(%arg0: i32) -> (i32, i32) {
    %c0_i32 = arith.constant 0 : i32
    %c0_i32_0 = arith.constant 0 : i32
    %c0_i32_1 = arith.constant 0 : i32
    return %c0_i32, %c0_i32_0 : i32, i32
  }
  func.func @transform_1(%arg0: i32) -> (i32, i32) {
    %c0_i32 = arith.constant 0 : i32
    %c0_i32_0 = arith.constant 0 : i32
    %c0_i32_1 = arith.constant 0 : i32
    return %c0_i32, %c0_i32_0 : i32, i32
  }
  func.func @transform_2(%arg0: i32) -> (i32, i32) {
    %c0_i32 = arith.constant 0 : i32
    %c0_i32_0 = arith.constant 0 : i32
    %c0_i32_1 = arith.constant 0 : i32
    return %c0_i32, %c0_i32_0 : i32, i32
  }
  func.func @transform_3(%arg0: i32) -> (i32, i32) {
    %c0_i32 = arith.constant 0 : i32
    %c0_i32_0 = arith.constant 0 : i32
    %c0_i32_1 = arith.constant 0 : i32
    return %c0_i32, %c0_i32_0 : i32, i32
  }
  func.func @transform_4(%arg0: i32) -> (i32, i32) {
    %c0_i32 = arith.constant 0 : i32
    %c0_i32_0 = arith.constant 0 : i32
    %c0_i32_1 = arith.constant 0 : i32
    return %c0_i32, %c0_i32_0 : i32, i32
  }
  func.func @transform_5(%arg0: i32) -> (i32, i32) {
    %c0_i32 = arith.constant 0 : i32
    %c0_i32_0 = arith.constant 0 : i32
    %c0_i32_1 = arith.constant 0 : i32
    return %c0_i32, %c0_i32_0 : i32, i32
  }
  func.func @transform_6(%arg0: i32) -> (i32, i32) {
    %c0_i32 = arith.constant 0 : i32
    %c0_i32_0 = arith.constant 0 : i32
    %c0_i32_1 = arith.constant 0 : i32
    return %c0_i32, %c0_i32_0 : i32, i32
  }
  func.func @transform_7(%arg0: i32) -> (i32, i32) {
    %c0_i32 = arith.constant 0 : i32
    %c0_i32_0 = arith.constant 0 : i32
    %c0_i32_1 = arith.constant 0 : i32
    return %c0_i32, %c0_i32_0 : i32, i32
  }
  func.func @transform_8(%arg0: i32) -> (i32, i32) {
    %c0_i32 = arith.constant 0 : i32
    %c0_i32_0 = arith.constant 0 : i32
    %c0_i32_1 = arith.constant 0 : i32
    return %c0_i32, %c0_i32_0 : i32, i32
  }
}

</mosaic_0001>

<bundles_post_ra>
// kernel: my_lstm_forward.1
= control target key start
LH: loop header
LB: loop body
LE: loop exit
PB: predicated region body
PF: predicated region fallthrough
CT: control target
= control target key end

     0   :  { %13 = vsyncpa [#allocation3], 0  ;;  %s2771_s0 = inlined_call_operand.vmem [shape: f32[16,128], index: 0, kind: input, shape index: {}]   ;;  %s2772_s1 = inlined_call_operand.hbm [shape: bf16[128,512], index: 1, kind: input, shape index: {}]   ;;  %s2773_s2 = inlined_call_operand.hbm [shape: bf16[128,512], index: 2, kind: input, shape index: {}]   ;;  %s2774_s3 = inlined_call_operand.vmem [shape: f32[1,512], index: 3, kind: input, shape index: {}]   ;;  %s2775_s4 = inlined_call_operand.vmem [shape: bf16[128,128], index: 4, kind: input, shape index: {}]   ;;  %s2776_s5 = inlined_call_operand.vmem [shape: f32[1,128], index: 5, kind: input, shape index: {}]   ;;  %s2777_s6 = inlined_call_operand.hbm [shape: bf16[128,128], index: 6, kind: input, shape index: {}]   ;;  %s2778_s7 = inlined_call_operand.vmem [shape: f32[1,128], index: 7, kind: input, shape index: {}]   ;;  %s2779_s8 = inlined_call_operand.vmem [shape: f32[16,128], index: 8, kind: output, shape index: {}]  }
   0x1   :  { %14 = vsyncpa [#allocation5], 0  ;;  %s2198_s27 = smov [#allocation4]   ;;  %s2199_s29 = smov [#allocation2]  }
   0x2   :  { %s34_s28 = sshll.u32 %s2198_s27, 4  ;;  %s22_s30 = sshll.u32 %s2199_s29, 4  ;;  %s35_s28 = int_to_ptr.vmem [resolvable:$true] %s34_s28  ;;  %s23_s30 = int_to_ptr.vmem [resolvable:$true] %s22_s30 }
   0x3   :  { %s2142_s9 = scalar_lea.vmem %s35_s28, 4096  ;;  %p2147_p1 = scmp.lt.s32.totalorder %s35_s28, %s35_s28 }
   0x4   :  { %p2143_p0 = scmp.ne.s32.totalorder %s35_s28, %s2142_s9  ;;  %p2148_p2 = scmp.lt.s32.totalorder %s2142_s9, %s2142_s9 }
   0x6   :  { %p2149_p3 = por %p2148_p2, %p2147_p1 }
   0x8   :  { %p2150_p4 = pnand %p2149_p3, %p2143_p0 }
   0xa   :  { %2153 = shalt.err (!%p2150_p4)
}
   0xb   :  { %s2200_s10 = smov 256   ;;  %s2201_s11 = smov 16  }
   0xc   :  { %40 = dma.hbm_to_vmem [thread:$0]  %s2773_s2, 4096, %s35_s28, [#allocation5], %s2200_s10, %s2200_s10, %s2201_s11  }
   0xd   :  { %s2162_s14 = scalar_lea.vmem %s23_s30, 4096  ;;  %p2167_p6 = scmp.lt.s32.totalorder %s23_s30, %s23_s30 }
   0xe   :  { %p2163_p5 = scmp.ne.s32.totalorder %s23_s30, %s2162_s14  ;;  %p2168_p7 = scmp.lt.s32.totalorder %s2162_s14, %s2162_s14 }
  0x10   :  { %p2169_p8 = por %p2168_p7, %p2167_p6 }
  0x12   :  { %p2170_p9 = pnand %p2169_p8, %p2163_p5 }
  0x14   :  { %2173 = shalt.err (!%p2170_p9)
}
  0x15   :  { %28 = dma.hbm_to_vmem [thread:$0]  %s2772_s1, 4096, %s23_s30, [#allocation3], %s2200_s10, %s2200_s10, %s2201_s11  }
  0x16   :  { %s2202_s17 = smov [#allocation6]  }
  0x17   :  { %s52_s18 = sshll.u32 %s2202_s17, 4  ;;  %s53_s18 = int_to_ptr.vmem [resolvable:$true] %s52_s18 }
  0x18   :  { %s2182_s19 = scalar_lea.vmem %s53_s18, 1024  ;;  %p2187_p11 = scmp.lt.s32.totalorder %s53_s18, %s53_s18 }
  0x19   :  { %p2183_p10 = scmp.ne.s32.totalorder %s53_s18, %s2182_s19  ;;  %p2188_p12 = scmp.lt.s32.totalorder %s2182_s19, %s2182_s19 }
  0x1b   :  { %p2189_p13 = por %p2188_p12, %p2187_p11 }
  0x1d   :  { %p2190_p0 = pnand %p2189_p13, %p2183_p10 }
  0x1f   :  { %2193 = shalt.err (!%p2190_p0)
}
  0x20   :  { %s2203_s2 = smov 64   ;;  %s2204_s20 = smov 4  }
  0x21   :  { %58 = dma.hbm_to_vmem [thread:$0]  %s2777_s6, 1024, %s53_s18, [#allocation5], %s2203_s2, %s2203_s2, %s2204_s20  }
  0x22   :  { %2194 = dma.done.wait [#allocation3], 4096  }
  0x23   :  { %2195 = vsyncadd [#allocation3], 4294963200 }
  0x24   :  { %2196 = dma.done.wait [#allocation5], 5120  }
  0x25   :  { %2197 = vsyncadd [#allocation5], 4294962176  ;;  %v2205_v0 = vmov 0   ;;  %v1910_v1 = vld [vmem:[#allocation2 + $0xe4] ss:$16 sps:$4 sm:$0xff]   ;;  %v104_v34 = vld [vmem:[%s2771_s0 + $0x8] sm:$0xff] }
  0x26   :  { %352 = vmatprep.mubr.bf16.mxu0 %v2205_v0  ;;  %395 = vmatprep.mubr.bf16.mxu1 %v2205_v0  ;;  %v1912_v2 = vld [vmem:[#allocation2 + $0xec] ss:$16 sps:$4 sm:$0xff]   ;;  %v1914_v3 = vld [vmem:[#allocation2 + $0xe0] ss:$16 sps:$4 sm:$0xff]   ;;  %v1915_v4 = vld [vmem:[#allocation2 + $0xe8] ss:$16 sps:$4 sm:$0xff]  }
  0x27   :  { %320 = vmatprep.subr.bf16.mxu0 %v1910_v1  ;;  %363 = vmatprep.subr.bf16.mxu1 %v1912_v2  ;;  %v1916_v5 = vld [vmem:[#allocation2 + $0xc4] ss:$16 sps:$4 sm:$0xff]   ;;  %v1918_v6 = vld [vmem:[#allocation2 + $0xcc] ss:$16 sps:$4 sm:$0xff]   ;;  %v1920_v7 = vld [vmem:[#allocation2 + $0xc0] ss:$16 sps:$4 sm:$0xff]  }
  0x28   :  { %321 = vmatpush1.bf16.msra.mxu0 %v1914_v3  ;;  %364 = vmatpush1.bf16.msra.mxu1 %v1915_v4  ;;  %v1921_v8 = vld [vmem:[#allocation2 + $0xc8] ss:$16 sps:$4 sm:$0xff]   ;;  %v1922_v9 = vld [vmem:[#allocation2 + $0xa4] ss:$16 sps:$4 sm:$0xff]   ;;  %v1924_v10 = vld [vmem:[#allocation2 + $0xac] ss:$16 sps:$4 sm:$0xff]  }
  0x29   :  { %322 = vmatprep.subr.bf16.mxu0 %v1916_v5  ;;  %365 = vmatprep.subr.bf16.mxu1 %v1918_v6  ;;  %v1926_v11 = vld [vmem:[#allocation2 + $0xa0] ss:$16 sps:$4 sm:$0xff]   ;;  %v1927_v12 = vld [vmem:[#allocation2 + $0xa8] ss:$16 sps:$4 sm:$0xff]   ;;  %v1928_v13 = vld [vmem:[#allocation2 + $0x84] ss:$16 sps:$4 sm:$0xff]   ;;  %v140_v5 = vlaneseq }
  0x2a   :  { %v1930_v14 = vld [vmem:[#allocation2 + $0x8c] ss:$16 sps:$4 sm:$0xff]   ;;  %v1932_v15 = vld [vmem:[#allocation2 + $0x80] ss:$16 sps:$4 sm:$0xff]   ;;  %v1933_v16 = vld [vmem:[#allocation2 + $0x88] ss:$16 sps:$4 sm:$0xff]  }
  0x2b   :  { %v1934_v17 = vld [vmem:[#allocation2 + $0x64] ss:$16 sps:$4 sm:$0xff]   ;;  %v1936_v18 = vld [vmem:[#allocation2 + $0x6c] ss:$16 sps:$4 sm:$0xff]   ;;  %v1938_v19 = vld [vmem:[#allocation2 + $0x60] ss:$16 sps:$4 sm:$0xff]  }
  0x2c   :  { %323 = vmatpush1.bf16.msra.mxu0 %v1920_v7  ;;  %366 = vmatpush1.bf16.msra.mxu1 %v1921_v8  ;;  %v1939_v20 = vld [vmem:[#allocation2 + $0x68] ss:$16 sps:$4 sm:$0xff]   ;;  %v1940_v21 = vld [vmem:[#allocation2 + $0x44] ss:$16 sps:$4 sm:$0xff]   ;;  %v1942_v22 = vld [vmem:[#allocation2 + $0x4c] ss:$16 sps:$4 sm:$0xff]  }
  0x2d   :  { %324 = vmatprep.subr.bf16.mxu0 %v1922_v9  ;;  %367 = vmatprep.subr.bf16.mxu1 %v1924_v10  ;;  %v1944_v23 = vld [vmem:[#allocation2 + $0x40] ss:$16 sps:$4 sm:$0xff]   ;;  %v1945_v24 = vld [vmem:[#allocation2 + $0x48] ss:$16 sps:$4 sm:$0xff]   ;;  %v1946_v25 = vld [vmem:[#allocation2 + $0x24] ss:$16 sps:$4 sm:$0xff]  }
  0x2e   :  { %v1948_v26 = vld [vmem:[#allocation2 + $0x2c] ss:$16 sps:$4 sm:$0xff]   ;;  %v1950_v27 = vld [vmem:[#allocation2 + $0x20] ss:$16 sps:$4 sm:$0xff]   ;;  %v1951_v28 = vld [vmem:[#allocation2 + $0x28] ss:$16 sps:$4 sm:$0xff]  }
  0x2f   :  { %v1952_v29 = vld [vmem:[#allocation2 + $0x4] ss:$16 sps:$4 sm:$0xff]   ;;  %v1954_v30 = vld [vmem:[#allocation2 + $0xc] ss:$16 sps:$4 sm:$0xff]   ;;  %v1956_v31 = vld [vmem:[#allocation2] ss:$16 sps:$4 sm:$0xff]  }
  0x30   :  { %325 = vmatpush1.bf16.msra.mxu0 %v1926_v11  ;;  %368 = vmatpush1.bf16.msra.mxu1 %v1927_v12  ;;  %v1957_v32 = vld [vmem:[#allocation2 + $0x8] ss:$16 sps:$4 sm:$0xff]   ;;  %v103_v33 = vld [vmem:[%s2771_s0] sm:$0xff]  ;;  %v2272_v36 = vld [vmem:[#allocation4 + $0xec] ss:$16 sps:$4 sm:$0xff]   ;;  %v141_v6 = vshrl.u32 %v140_v5, 7 }
  0x31   :  { %326 = vmatprep.subr.bf16.mxu0 %v1928_v13  ;;  %369 = vmatprep.subr.bf16.mxu1 %v1930_v14  ;;  %v2270_v35 = vld [vmem:[#allocation4 + $0xe4] ss:$16 sps:$4 sm:$0xff]   ;;  %v105_v37 = vpack.c.bf16 %v104_v34, %v103_v33  ;;  %v2274_v38 = vld [vmem:[#allocation4 + $0xe0] ss:$16 sps:$4 sm:$0xff]   ;;  %v2276_v39 = vld [vmem:[#allocation4 + $0xe8] ss:$16 sps:$4 sm:$0xff]  }
  0x32   :  { %v2278_v40 = vld [vmem:[#allocation4 + $0xc4] ss:$16 sps:$4 sm:$0xff]   ;;  %v2282_v41 = vld [vmem:[#allocation4 + $0xcc] ss:$16 sps:$4 sm:$0xff]   ;;  %v2284_v42 = vld [vmem:[#allocation4 + $0xc0] ss:$16 sps:$4 sm:$0xff]  }
  0x33   :  { %v2288_v43 = vld [vmem:[#allocation4 + $0xc8] ss:$16 sps:$4 sm:$0xff]   ;;  %v2292_v44 = vld [vmem:[#allocation4 + $0xa4] ss:$16 sps:$4 sm:$0xff]   ;;  %v2294_v45 = vld [vmem:[#allocation4 + $0xac] ss:$16 sps:$4 sm:$0xff]  }
  0x34   :  { %327 = vmatpush1.bf16.msra.mxu0 %v1932_v15  ;;  %370 = vmatpush1.bf16.msra.mxu1 %v1933_v16  ;;  %v2298_v46 = vld [vmem:[#allocation4 + $0xa0] ss:$16 sps:$4 sm:$0xff]   ;;  %v2302_v47 = vld [vmem:[#allocation4 + $0xa8] ss:$16 sps:$4 sm:$0xff]   ;;  %v2304_v48 = vld [vmem:[#allocation4 + $0x84] ss:$16 sps:$4 sm:$0xff]  }
  0x35   :  { %328 = vmatprep.subr.bf16.mxu0 %v1934_v17  ;;  %371 = vmatprep.subr.bf16.mxu1 %v1936_v18  ;;  %v2308_v49 = vld [vmem:[#allocation4 + $0x8c] ss:$16 sps:$4 sm:$0xff]   ;;  %v2310_v50 = vld [vmem:[#allocation4 + $0x80] ss:$16 sps:$4 sm:$0xff]   ;;  %v2312_v51 = vld [vmem:[#allocation4 + $0x88] ss:$16 sps:$4 sm:$0xff]  }
  0x36   :  { %v2314_v52 = vld [vmem:[#allocation4 + $0x64] ss:$16 sps:$4 sm:$0xff]   ;;  %v2316_v53 = vld [vmem:[#allocation4 + $0x6c] ss:$16 sps:$4 sm:$0xff]   ;;  %v2322_v54 = vld [vmem:[#allocation4 + $0x60] ss:$16 sps:$4 sm:$0xff]  }
  0x37   :  { %v2324_v55 = vld [vmem:[#allocation4 + $0x68] ss:$16 sps:$4 sm:$0xff]   ;;  %v2326_v56 = vld [vmem:[#allocation4 + $0x44] ss:$16 sps:$4 sm:$0xff]   ;;  %v2328_v57 = vld [vmem:[#allocation4 + $0x4c] ss:$16 sps:$4 sm:$0xff]  }
  0x38   :  { %329 = vmatpush1.bf16.msra.mxu0 %v1938_v19  ;;  %372 = vmatpush1.bf16.msra.mxu1 %v1939_v20  ;;  %v2334_v58 = vld [vmem:[#allocation4 + $0x40] ss:$16 sps:$4 sm:$0xff]   ;;  %v2336_v59 = vld [vmem:[#allocation4 + $0x48] ss:$16 sps:$4 sm:$0xff]   ;;  %v2338_v60 = vld [vmem:[#allocation4 + $0x24] ss:$16 sps:$4 sm:$0xff]  }
  0x39   :  { %330 = vmatprep.subr.bf16.mxu0 %v1940_v21  ;;  %373 = vmatprep.subr.bf16.mxu1 %v1942_v22  ;;  %v2340_v61 = vld [vmem:[#allocation4 + $0x2c] ss:$16 sps:$4 sm:$0xff]   ;;  %v2348_v62 = vld [vmem:[#allocation4 + $0x20] ss:$16 sps:$4 sm:$0xff]   ;;  %v2350_v63 = vld [vmem:[#allocation4 + $0x28] ss:$16 sps:$4 sm:$0xff]  }
  0x3a   :  { %v2354_v1 = vld [vmem:[#allocation4 + $0x4] ss:$16 sps:$4 sm:$0xff]   ;;  %v2356_v2 = vld [vmem:[#allocation4 + $0xc] ss:$16 sps:$4 sm:$0xff]   ;;  %v2360_v3 = vld [vmem:[#allocation4] ss:$16 sps:$4 sm:$0xff]  }
  0x3b   :  { %v2362_v4 = vld [vmem:[#allocation4 + $0x8] ss:$16 sps:$4 sm:$0xff]   ;;  %v150_v7 = vsub.s32 2, %v141_v6  ;;  %v142_v8 = vsub.s32 0, %v141_v6  ;;  %v154_v9 = vsub.s32 3, %v141_v6  ;;  %v146_v13 = vsub.s32 1, %v141_v6 }
  0x3c   :  { %331 = vmatpush1.bf16.msra.mxu0 %v1944_v23  ;;  %374 = vmatpush1.bf16.msra.mxu1 %v1945_v24  ;;  %v138_v10 = vld [vmem:[%s2774_s3] sm:$0xf]  ;;  %vm1513_vm0 = vcmask 1041408   ;;  %vm1515_vm1 = vcmask 1043456   ;;  %vm1517_vm2 = vcmask 1045504   ;;  %vm2207_vm3 = vmmov 0  }
  0x3d   :  { %332 = vmatprep.subr.bf16.mxu0 %v1946_v25  ;;  %375 = vmatprep.subr.bf16.mxu1 %v1948_v26  ;;  %v151_v14 = vrot.slane %v138_v10, %v150_v7  ;;  %v143_v17 = vrot.slane %v138_v10, %v142_v8  ;;  %v155_v18 = vrot.slane %v138_v10, %v154_v9 }
  0x3e   :  { %v147_v21 = vrot.slane %v138_v10, %v146_v13 }
  0x40   :  { %333 = vmatpush1.bf16.msra.mxu0 %v1950_v27  ;;  %376 = vmatpush1.bf16.msra.mxu1 %v1951_v28 }
  0x41   :  { %334 = vmatprep.subr.bf16.mxu0 %v1952_v29  ;;  %377 = vmatprep.subr.bf16.mxu1 %v1954_v30 }
  0x44   :  { %335 = vmatpush1.bf16.msra.mxu0 %v1956_v31  ;;  %378 = vmatpush1.bf16.msra.mxu1 %v1957_v32 }
  0x45   :  { %566 = vmatprep.subr.bf16.mxu0 %v2270_v35  ;;  %607 = vmatprep.subr.bf16.mxu1 %v2272_v36 }
  0x47   :  { %353 = vmatmul.mubr.bf16.vlgmr.msra.gmra.mxu0 %v105_v37  ;;  %396 = vmatmul.mubr.bf16.vlgmr.msra.gmra.mxu1 %v105_v37 }
  0x48   :  { %567 = vmatpush1.bf16.msra.mxu0 %v2274_v38  ;;  %608 = vmatpush1.bf16.msra.mxu1 %v2276_v39 }
  0x49   :  { %568 = vmatprep.subr.bf16.mxu0 %v2278_v40  ;;  %609 = vmatprep.subr.bf16.mxu1 %v2282_v41 }
  0x4a   :  { %598 = vmatprep.mubr.bf16.mxu0 %v2205_v0  ;;  %639 = vmatprep.mubr.bf16.mxu1 %v2205_v0 }
  0x4c   :  { %569 = vmatpush1.bf16.msra.mxu0 %v2284_v42  ;;  %610 = vmatpush1.bf16.msra.mxu1 %v2288_v43 }
  0x4d   :  { %570 = vmatprep.subr.bf16.mxu0 %v2292_v44  ;;  %611 = vmatprep.subr.bf16.mxu1 %v2294_v45 }
  0x50   :  { %571 = vmatpush1.bf16.msra.mxu0 %v2298_v46  ;;  %612 = vmatpush1.bf16.msra.mxu1 %v2302_v47 }
  0x51   :  { %572 = vmatprep.subr.bf16.mxu0 %v2304_v48  ;;  %613 = vmatprep.subr.bf16.mxu1 %v2308_v49 }
  0x54   :  { %573 = vmatpush1.bf16.msra.mxu0 %v2310_v50  ;;  %614 = vmatpush1.bf16.msra.mxu1 %v2312_v51 }
  0x55   :  { %574 = vmatprep.subr.bf16.mxu0 %v2314_v52  ;;  %615 = vmatprep.subr.bf16.mxu1 %v2316_v53 }
  0x58   :  { %575 = vmatpush1.bf16.msra.mxu0 %v2322_v54  ;;  %616 = vmatpush1.bf16.msra.mxu1 %v2324_v55 }
  0x59   :  { %576 = vmatprep.subr.bf16.mxu0 %v2326_v56  ;;  %617 = vmatprep.subr.bf16.mxu1 %v2328_v57 }
  0x5c   :  { %577 = vmatpush1.bf16.msra.mxu0 %v2334_v58  ;;  %618 = vmatpush1.bf16.msra.mxu1 %v2336_v59 }
  0x5d   :  { %578 = vmatprep.subr.bf16.mxu0 %v2338_v60  ;;  %619 = vmatprep.subr.bf16.mxu1 %v2340_v61 }
  0x60   :  { %579 = vmatpush1.bf16.msra.mxu0 %v2348_v62  ;;  %620 = vmatpush1.bf16.msra.mxu1 %v2350_v63 }
  0x61   :  { %580 = vmatprep.subr.bf16.mxu0 %v2354_v1  ;;  %621 = vmatprep.subr.bf16.mxu1 %v2356_v2 }
  0x64   :  { %581 = vmatpush1.bf16.msra.mxu0 %v2360_v3  ;;  %622 = vmatpush1.bf16.msra.mxu1 %v2362_v4 }
  0x65   :  { %671 = vmatprep.subr.bf16.mxu0 %v2270_v35  ;;  %712 = vmatprep.subr.bf16.mxu1 %v2272_v36 }
  0x67   :  { %599 = vmatmul.mubr.bf16.vlgmr.msra.gmra.mxu0 %v2205_v0  ;;  %640 = vmatmul.mubr.bf16.vlgmr.msra.gmra.mxu1 %v2205_v0 }
  0x68   :  { %672 = vmatpush1.bf16.msra.mxu0 %v2274_v38  ;;  %713 = vmatpush1.bf16.msra.mxu1 %v2276_v39 }
  0x69   :  { %673 = vmatprep.subr.bf16.mxu0 %v2278_v40  ;;  %714 = vmatprep.subr.bf16.mxu1 %v2282_v41 }
  0x6a   :  { %703 = vmatprep.mubr.bf16.mxu0 %v2205_v0  ;;  %744 = vmatprep.mubr.bf16.mxu1 %v2205_v0 }
  0x6c   :  { %674 = vmatpush1.bf16.msra.mxu0 %v2284_v42  ;;  %715 = vmatpush1.bf16.msra.mxu1 %v2288_v43 }
  0x6d   :  { %675 = vmatprep.subr.bf16.mxu0 %v2292_v44  ;;  %716 = vmatprep.subr.bf16.mxu1 %v2294_v45 }
  0x70   :  { %676 = vmatpush1.bf16.msra.mxu0 %v2298_v46  ;;  %717 = vmatpush1.bf16.msra.mxu1 %v2302_v47 }
  0x71   :  { %677 = vmatprep.subr.bf16.mxu0 %v2304_v48  ;;  %718 = vmatprep.subr.bf16.mxu1 %v2308_v49 }
  0x74   :  { %678 = vmatpush1.bf16.msra.mxu0 %v2310_v50  ;;  %719 = vmatpush1.bf16.msra.mxu1 %v2312_v51 }
  0x75   :  { %679 = vmatprep.subr.bf16.mxu0 %v2314_v52  ;;  %720 = vmatprep.subr.bf16.mxu1 %v2316_v53 }
  0x78   :  { %680 = vmatpush1.bf16.msra.mxu0 %v2322_v54  ;;  %721 = vmatpush1.bf16.msra.mxu1 %v2324_v55 }
  0x79   :  { %681 = vmatprep.subr.bf16.mxu0 %v2326_v56  ;;  %722 = vmatprep.subr.bf16.mxu1 %v2328_v57 }
  0x7c   :  { %682 = vmatpush1.bf16.msra.mxu0 %v2334_v58  ;;  %723 = vmatpush1.bf16.msra.mxu1 %v2336_v59 }
  0x7d   :  { %683 = vmatprep.subr.bf16.mxu0 %v2338_v60  ;;  %724 = vmatprep.subr.bf16.mxu1 %v2340_v61 }
  0x80   :  { %684 = vmatpush1.bf16.msra.mxu0 %v2348_v62  ;;  %725 = vmatpush1.bf16.msra.mxu1 %v2350_v63 }
  0x81   :  { %685 = vmatprep.subr.bf16.mxu0 %v2354_v1  ;;  %726 = vmatprep.subr.bf16.mxu1 %v2356_v2 }
  0x84   :  { %686 = vmatpush1.bf16.msra.mxu0 %v2360_v3  ;;  %727 = vmatpush1.bf16.msra.mxu1 %v2362_v4 }
  0x85   :  { %794 = vmatprep.subr.bf16.mxu0 %v2270_v35  ;;  %835 = vmatprep.subr.bf16.mxu1 %v2272_v36 }
 0x107   :  { %v354_v11 = vpop.f32.mrf.mxu0  ;;  %v397_v12 = vpop.f32.mrf.mxu1 }
 0x108   :  { %v2417_v28 = vadd.f32 %v354_v11, %v143_v17  ;;  %v2423_v8 = vadd.f32 %v397_v12, %v151_v14 }
 0x109   :  { %v356_v15 = vpop.f32.mrf.mxu0  ;;  %v399_v16 = vpop.f32.mrf.mxu1 }
 0x10a   :  { %v2419_v31 = vadd.f32 %v356_v15, %v147_v21  ;;  %v2426_v15 = vadd.f32 %v399_v16, %v155_v18 }
 0x10b   :  { %v358_v19 = vpop.f32.mrf.mxu0  ;;  %v401_v20 = vpop.f32.mrf.mxu1 }
 0x10c   :  { %v2409_v22 = vadd.f32 %v358_v19, %v143_v17  ;;  %v2411_v23 = vadd.f32 %v401_v20, %v151_v14 }
 0x10d   :  { %v360_v24 = vpop.f32.mrf.mxu0  ;;  %v403_v25 = vpop.f32.mrf.mxu1 }
 0x10e   :  { %v2413_v26 = vadd.f32 %v360_v24, %v147_v21  ;;  %v2415_v27 = vadd.f32 %v403_v25, %v155_v18 }
 0x127   :  { %v600_v29 = vpop.f32.mrf.mxu0  ;;  %v641_v30 = vpop.f32.mrf.mxu1 }
 0x128   :  { %v648_v32 = vadd.f32 %v600_v29, %v2417_v28  ;;  %v650_v13 = vadd.f32 %v641_v30, %v2423_v8 }
 0x129   :  { %v602_v33 = vpop.f32.mrf.mxu0  ;;  %v643_v34 = vpop.f32.mrf.mxu1 }
 0x12a   :  { %v652_v37 = vmul.f32 0.5, %v648_v32  ;;  %v649_v5 = vadd.f32 %v602_v33, %v2419_v31  ;;  %v651_v17 = vadd.f32 %v643_v34, %v2426_v15 }
 0x12b   :  { %v604_v6 = vpop.f32.mrf.mxu0  ;;  %v645_v7 = vpop.f32.mrf.mxu1 }
 0x12c   :  { %2022 = vtanh.f32 %v652_v37  ;;  %v656_v9 = vmul.f32 0.5, %v649_v5  ;;  %v661_v19 = vmul.f32 0.5, %v651_v17 }
 0x12d   :  { %v605_v10 = vpop.f32.mrf.mxu0  ;;  %v646_v11 = vpop.f32.mrf.mxu1 }
 0x12e   :  { %2024 = vtanh.f32 %v656_v9 }
 0x12f   :  { %2026 = vtanh.f32 %v650_v13 }
 0x130   :  { %2028 = vtanh.f32 %v661_v19 }
 0x139   :  { %v2023_v20 = vpop.eup %2022 }
 0x13a   :  { %v654_v21 = vmul.f32 0.5, %v2023_v20 }
 0x13b   :  { %v2025_v24 = vpop.eup %2024 }
 0x13c   :  { %v655_v25 = vadd.f32 0.5, %v654_v21  ;;  %v658_v29 = vmul.f32 0.5, %v2025_v24  ;;  %v2027_v14 = vpop.eup %2026 }
 0x13d   :  { %v2029_v16 = vpop.eup %2028 }
 0x13e   :  { %v659_v12 = vadd.f32 0.5, %v658_v29  ;;  %v666_v33 = vmul.f32 %v2027_v14, %v655_v25  ;;  %v663_v18 = vmul.f32 0.5, %v2029_v16 }
 0x140   :  { %v665_v32 = vmul.f32 0.0, %v659_v12  ;;  %v664_v30 = vadd.f32 0.5, %v663_v18 }
 0x142   :  { %v2429_v37 = vadd.f32 %v666_v33, %v665_v32 }
 0x144   :  { %2030 = vtanh.f32 %v2429_v37 }
 0x151   :  { %v2031_v5 = vpop.eup %2030 }
 0x152   :  { %v2432_v34 = vmul.f32 %v2031_v5, %v664_v30 }
 0x154   :  { %v670_v6 = vpack.c.bf16 %v2432_v34, %v2432_v34 }
 0x156   :  { %704 = vmatmul.mubr.bf16.vlgmr.msra.gmra.mxu0 %v670_v6  ;;  %745 = vmatmul.mubr.bf16.vlgmr.msra.gmra.mxu1 %v670_v6 }
 0x157   :  { %795 = vmatpush1.bf16.msra.mxu0 %v2274_v38  ;;  %836 = vmatpush1.bf16.msra.mxu1 %v2276_v39 }
 0x158   :  { %796 = vmatprep.subr.bf16.mxu0 %v2278_v40  ;;  %837 = vmatprep.subr.bf16.mxu1 %v2282_v41 }
 0x159   :  { %826 = vmatprep.mubr.bf16.mxu0 %v2205_v0  ;;  %867 = vmatprep.mubr.bf16.mxu1 %v2205_v0 }
 0x15b   :  { %797 = vmatpush1.bf16.msra.mxu0 %v2284_v42  ;;  %838 = vmatpush1.bf16.msra.mxu1 %v2288_v43 }
 0x15c   :  { %798 = vmatprep.subr.bf16.mxu0 %v2292_v44  ;;  %839 = vmatprep.subr.bf16.mxu1 %v2294_v45 }
 0x15f   :  { %799 = vmatpush1.bf16.msra.mxu0 %v2298_v46  ;;  %840 = vmatpush1.bf16.msra.mxu1 %v2302_v47 }
 0x160   :  { %800 = vmatprep.subr.bf16.mxu0 %v2304_v48  ;;  %841 = vmatprep.subr.bf16.mxu1 %v2308_v49 }
 0x163   :  { %801 = vmatpush1.bf16.msra.mxu0 %v2310_v50  ;;  %842 = vmatpush1.bf16.msra.mxu1 %v2312_v51 }
 0x164   :  { %802 = vmatprep.subr.bf16.mxu0 %v2314_v52  ;;  %843 = vmatprep.subr.bf16.mxu1 %v2316_v53 }
 0x167   :  { %803 = vmatpush1.bf16.msra.mxu0 %v2322_v54  ;;  %844 = vmatpush1.bf16.msra.mxu1 %v2324_v55 }
 0x168   :  { %804 = vmatprep.subr.bf16.mxu0 %v2326_v56  ;;  %845 = vmatprep.subr.bf16.mxu1 %v2328_v57 }
 0x16b   :  { %805 = vmatpush1.bf16.msra.mxu0 %v2334_v58  ;;  %846 = vmatpush1.bf16.msra.mxu1 %v2336_v59 }
 0x16c   :  { %806 = vmatprep.subr.bf16.mxu0 %v2338_v60  ;;  %847 = vmatprep.subr.bf16.mxu1 %v2340_v61 }
 0x16f   :  { %807 = vmatpush1.bf16.msra.mxu0 %v2348_v62  ;;  %848 = vmatpush1.bf16.msra.mxu1 %v2350_v63 }
 0x170   :  { %808 = vmatprep.subr.bf16.mxu0 %v2354_v1  ;;  %849 = vmatprep.subr.bf16.mxu1 %v2356_v2 }
 0x173   :  { %809 = vmatpush1.bf16.msra.mxu0 %v2360_v3  ;;  %850 = vmatpush1.bf16.msra.mxu1 %v2362_v4 }
 0x174   :  { %917 = vmatprep.subr.bf16.mxu0 %v2270_v35  ;;  %958 = vmatprep.subr.bf16.mxu1 %v2272_v36 }
 0x216   :  { %v705_v7 = vpop.f32.mrf.mxu0  ;;  %v746_v9 = vpop.f32.mrf.mxu1 }
 0x217   :  { %v757_v10 = vrot.slane %v705_v7, 6  ;;  %v759_v25 = vrot.slane %v746_v9, 6  ;;  %v783_v9 = vrot.slane %v2429_v37, 6 }
 0x218   :  { %v707_v11 = vpop.f32.mrf.mxu0  ;;  %v748_v13 = vpop.f32.mrf.mxu1 }
 0x219   :  { %v765_v17 = vadd.f32 %v757_v10, %v2417_v28  ;;  %v758_v19 = vrot.slane %v707_v11, 6  ;;  %v767_v33 = vadd.f32 %v759_v25, %v2423_v8  ;;  %v760_v16 = vrot.slane %v748_v13, 6 }
 0x21a   :  { %v709_v20 = vpop.f32.mrf.mxu0  ;;  %v750_v21 = vpop.f32.mrf.mxu1 }
 0x21b   :  { %v769_v24 = vmul.f32 0.5, %v765_v17  ;;  %v766_v29 = vadd.f32 %v758_v19, %v2419_v31  ;;  %v768_v18 = vadd.f32 %v760_v16, %v2426_v15 }
 0x21c   :  { %v710_v12 = vpop.f32.mrf.mxu0  ;;  %v751_v14 = vpop.f32.mrf.mxu1 }
 0x21d   :  { %2032 = vtanh.f32 %v769_v24  ;;  %v773_v32 = vmul.f32 0.5, %v766_v29  ;;  %v778_v30 = vmul.f32 0.5, %v768_v18 }
 0x21f   :  { %2034 = vtanh.f32 %v773_v32 }
 0x220   :  { %2036 = vtanh.f32 %v767_v33 }
 0x221   :  { %2038 = vtanh.f32 %v778_v30 }
 0x22a   :  { %v2033_v5 = vpop.eup %2032 }
 0x22b   :  { %v771_v6 = vmul.f32 0.5, %v2033_v5 }
 0x22c   :  { %v2035_v7 = vpop.eup %2034 }
 0x22d   :  { %v772_v10 = vadd.f32 0.5, %v771_v6  ;;  %v775_v11 = vmul.f32 0.5, %v2035_v7  ;;  %v2037_v19 = vpop.eup %2036 }
 0x22e   :  { %v2039_v13 = vpop.eup %2038 }
 0x22f   :  { %v776_v17 = vadd.f32 0.5, %v775_v11  ;;  %v786_v21 = vmul.f32 %v2037_v19, %v772_v10  ;;  %v780_v25 = vmul.f32 0.5, %v2039_v13 }
 0x231   :  { %v785_v20 = vmul.f32 %v783_v9, %v776_v17  ;;  %v781_v29 = vadd.f32 0.5, %v780_v25 }
 0x233   :  { %v2475_v24 = vadd.f32 %v786_v21, %v785_v20 }
 0x235   :  { %2040 = vtanh.f32 %v2475_v24 }
 0x242   :  { %v2041_v12 = vpop.eup %2040 }
 0x243   :  { %v2478_v14 = vmul.f32 %v2041_v12, %v781_v29 }
 0x245   :  { %v790_v32 = vpack.c.bf16 %v2478_v14, %v2478_v14 }
 0x247   :  { %v792_v33 = vrot.slane %v790_v32, 1 }
 0x249   :  { %827 = vmatmul.mubr.bf16.vlgmr.msra.gmra.mxu0 %v792_v33  ;;  %868 = vmatmul.mubr.bf16.vlgmr.msra.gmra.mxu1 %v792_v33 }
 0x24a   :  { %918 = vmatpush1.bf16.msra.mxu0 %v2274_v38  ;;  %959 = vmatpush1.bf16.msra.mxu1 %v2276_v39 }
 0x24b   :  { %919 = vmatprep.subr.bf16.mxu0 %v2278_v40  ;;  %960 = vmatprep.subr.bf16.mxu1 %v2282_v41 }
 0x24c   :  { %949 = vmatprep.mubr.bf16.mxu0 %v2205_v0  ;;  %990 = vmatprep.mubr.bf16.mxu1 %v2205_v0 }
 0x24e   :  { %920 = vmatpush1.bf16.msra.mxu0 %v2284_v42  ;;  %961 = vmatpush1.bf16.msra.mxu1 %v2288_v43 }
 0x24f   :  { %921 = vmatprep.subr.bf16.mxu0 %v2292_v44  ;;  %962 = vmatprep.subr.bf16.mxu1 %v2294_v45 }
 0x252   :  { %922 = vmatpush1.bf16.msra.mxu0 %v2298_v46  ;;  %963 = vmatpush1.bf16.msra.mxu1 %v2302_v47 }
 0x253   :  { %923 = vmatprep.subr.bf16.mxu0 %v2304_v48  ;;  %964 = vmatprep.subr.bf16.mxu1 %v2308_v49 }
 0x256   :  { %924 = vmatpush1.bf16.msra.mxu0 %v2310_v50  ;;  %965 = vmatpush1.bf16.msra.mxu1 %v2312_v51 }
 0x257   :  { %925 = vmatprep.subr.bf16.mxu0 %v2314_v52  ;;  %966 = vmatprep.subr.bf16.mxu1 %v2316_v53 }
 0x25a   :  { %926 = vmatpush1.bf16.msra.mxu0 %v2322_v54  ;;  %967 = vmatpush1.bf16.msra.mxu1 %v2324_v55 }
 0x25b   :  { %927 = vmatprep.subr.bf16.mxu0 %v2326_v56  ;;  %968 = vmatprep.subr.bf16.mxu1 %v2328_v57 }
 0x25e   :  { %928 = vmatpush1.bf16.msra.mxu0 %v2334_v58  ;;  %969 = vmatpush1.bf16.msra.mxu1 %v2336_v59 }
 0x25f   :  { %929 = vmatprep.subr.bf16.mxu0 %v2338_v60  ;;  %970 = vmatprep.subr.bf16.mxu1 %v2340_v61 }
 0x262   :  { %930 = vmatpush1.bf16.msra.mxu0 %v2348_v62  ;;  %971 = vmatpush1.bf16.msra.mxu1 %v2350_v63 }
 0x263   :  { %931 = vmatprep.subr.bf16.mxu0 %v2354_v1  ;;  %972 = vmatprep.subr.bf16.mxu1 %v2356_v2 }
 0x266   :  { %932 = vmatpush1.bf16.msra.mxu0 %v2360_v3  ;;  %973 = vmatpush1.bf16.msra.mxu1 %v2362_v4 }
 0x267   :  { %1040 = vmatprep.subr.bf16.mxu0 %v2270_v35  ;;  %1081 = vmatprep.subr.bf16.mxu1 %v2272_v36 }
 0x309   :  { %v828_v37 = vpop.f32.mrf.mxu0  ;;  %v869_v16 = vpop.f32.mrf.mxu1 }
 0x30a   :  { %v880_v18 = vrot.slane %v828_v37, 4  ;;  %v882_v17 = vrot.slane %v869_v16, 4 }
 0x30b   :  { %v830_v30 = vpop.f32.mrf.mxu0  ;;  %v871_v5 = vpop.f32.mrf.mxu1 }
 0x30c   :  { %v888_v6 = vadd.f32 %v880_v18, %v2417_v28  ;;  %v881_v7 = vrot.slane %v830_v30, 4  ;;  %v890_v25 = vadd.f32 %v882_v17, %v2423_v8  ;;  %v883_v29 = vrot.slane %v871_v5, 4 }
 0x30d   :  { %v832_v10 = vpop.f32.mrf.mxu0  ;;  %v873_v11 = vpop.f32.mrf.mxu1 }
 0x30e   :  { %v892_v9 = vmul.f32 0.5, %v888_v6  ;;  %v889_v19 = vadd.f32 %v881_v7, %v2419_v31  ;;  %v891_v12 = vadd.f32 %v883_v29, %v2426_v15  ;;  %v906_v7 = vrot.slane %v2475_v24, 6 }
 0x30f   :  { %v833_v20 = vpop.f32.mrf.mxu0  ;;  %v874_v21 = vpop.f32.mrf.mxu1 }
 0x310   :  { %2042 = vtanh.f32 %v892_v9  ;;  %v896_v13 = vmul.f32 0.5, %v889_v19  ;;  %v901_v32 = vmul.f32 0.5, %v891_v12 }
 0x312   :  { %2044 = vtanh.f32 %v896_v13 }
 0x313   :  { %2046 = vtanh.f32 %v890_v25  ;;  %v1514_v25 = vsel %vm1513_vm0, %v2432_v34, %v2478_v14 }
 0x314   :  { %2048 = vtanh.f32 %v901_v32 }
 0x31d   :  { %v2043_v33 = vpop.eup %2042 }
 0x31e   :  { %v894_v37 = vmul.f32 0.5, %v2043_v33 }
 0x31f   :  { %v2045_v18 = vpop.eup %2044 }
 0x320   :  { %v895_v30 = vadd.f32 0.5, %v894_v37  ;;  %v898_v6 = vmul.f32 0.5, %v2045_v18  ;;  %v2047_v10 = vpop.eup %2046 }
 0x321   :  { %v2049_v5 = vpop.eup %2048 }
 0x322   :  { %v899_v16 = vadd.f32 0.5, %v898_v6  ;;  %v909_v9 = vmul.f32 %v2047_v10, %v895_v30  ;;  %v903_v17 = vmul.f32 0.5, %v2049_v5 }
 0x324   :  { %v908_v11 = vmul.f32 %v906_v7, %v899_v16  ;;  %v904_v20 = vadd.f32 0.5, %v903_v17 }
 0x326   :  { %v2521_v19 = vadd.f32 %v909_v9, %v908_v11 }
 0x328   :  { %2050 = vtanh.f32 %v2521_v19 }
 0x335   :  { %v2051_v21 = vpop.eup %2050 }
 0x336   :  { %v912_v13 = vmul.f32 %v2051_v21, %v904_v20 }
 0x338   :  { %v913_v29 = vpack.c.bf16 %v912_v13, %v912_v13  ;;  %v2528_v24 = vsel %vm1515_vm1, %v1514_v25, %v912_v13 }
 0x33a   :  { %v915_v12 = vrot.slane %v913_v29, 2 }
 0x33c   :  { %950 = vmatmul.mubr.bf16.vlgmr.msra.gmra.mxu0 %v915_v12  ;;  %991 = vmatmul.mubr.bf16.vlgmr.msra.gmra.mxu1 %v915_v12 }
 0x33d   :  { %1041 = vmatpush1.bf16.msra.mxu0 %v2274_v38  ;;  %1082 = vmatpush1.bf16.msra.mxu1 %v2276_v39 }
 0x33e   :  { %1042 = vmatprep.subr.bf16.mxu0 %v2278_v40  ;;  %1083 = vmatprep.subr.bf16.mxu1 %v2282_v41 }
 0x33f   :  { %1072 = vmatprep.mubr.bf16.mxu0 %v2205_v0  ;;  %1113 = vmatprep.mubr.bf16.mxu1 %v2205_v0 }
 0x341   :  { %1043 = vmatpush1.bf16.msra.mxu0 %v2284_v42  ;;  %1084 = vmatpush1.bf16.msra.mxu1 %v2288_v43 }
 0x342   :  { %1044 = vmatprep.subr.bf16.mxu0 %v2292_v44  ;;  %1085 = vmatprep.subr.bf16.mxu1 %v2294_v45 }
 0x345   :  { %1045 = vmatpush1.bf16.msra.mxu0 %v2298_v46  ;;  %1086 = vmatpush1.bf16.msra.mxu1 %v2302_v47 }
 0x346   :  { %1046 = vmatprep.subr.bf16.mxu0 %v2304_v48  ;;  %1087 = vmatprep.subr.bf16.mxu1 %v2308_v49 }
 0x349   :  { %1047 = vmatpush1.bf16.msra.mxu0 %v2310_v50  ;;  %1088 = vmatpush1.bf16.msra.mxu1 %v2312_v51 }
 0x34a   :  { %1048 = vmatprep.subr.bf16.mxu0 %v2314_v52  ;;  %1089 = vmatprep.subr.bf16.mxu1 %v2316_v53 }
 0x34d   :  { %1049 = vmatpush1.bf16.msra.mxu0 %v2322_v54  ;;  %1090 = vmatpush1.bf16.msra.mxu1 %v2324_v55 }
 0x34e   :  { %1050 = vmatprep.subr.bf16.mxu0 %v2326_v56  ;;  %1091 = vmatprep.subr.bf16.mxu1 %v2328_v57 }
 0x351   :  { %1051 = vmatpush1.bf16.msra.mxu0 %v2334_v58  ;;  %1092 = vmatpush1.bf16.msra.mxu1 %v2336_v59 }
 0x352   :  { %1052 = vmatprep.subr.bf16.mxu0 %v2338_v60  ;;  %1093 = vmatprep.subr.bf16.mxu1 %v2340_v61 }
 0x355   :  { %1053 = vmatpush1.bf16.msra.mxu0 %v2348_v62  ;;  %1094 = vmatpush1.bf16.msra.mxu1 %v2350_v63 }
 0x356   :  { %1054 = vmatprep.subr.bf16.mxu0 %v2354_v1  ;;  %1095 = vmatprep.subr.bf16.mxu1 %v2356_v2 }
 0x359   :  { %1055 = vmatpush1.bf16.msra.mxu0 %v2360_v3  ;;  %1096 = vmatpush1.bf16.msra.mxu1 %v2362_v4 }
 0x35a   :  { %1148 = vmatprep.subr.bf16.mxu0 %v2270_v35  ;;  %1189 = vmatprep.subr.bf16.mxu1 %v2272_v36 }
 0x3fc   :  { %v951_v34 = vpop.f32.mrf.mxu0  ;;  %v992_v14 = vpop.f32.mrf.mxu1 }
 0x3fd   :  { %v1003_v32 = vrot.slane %v951_v34, 2  ;;  %v1005_v10 = vrot.slane %v992_v14, 2 }
 0x3fe   :  { %v953_v33 = vpop.f32.mrf.mxu0  ;;  %v994_v37 = vpop.f32.mrf.mxu1 }
 0x3ff   :  { %v1011_v18 = vadd.f32 %v1003_v32, %v2417_v28  ;;  %v1004_v30 = vrot.slane %v953_v33, 2  ;;  %v1013_v20 = vadd.f32 %v1005_v10, %v2423_v8  ;;  %v1006_v21 = vrot.slane %v994_v37, 2 }
 0x400   :  { %v955_v6 = vpop.f32.mrf.mxu0  ;;  %v996_v16 = vpop.f32.mrf.mxu1 }
 0x401   :  { %v1015_v7 = vmul.f32 0.5, %v1011_v18  ;;  %v1012_v11 = vadd.f32 %v1004_v30, %v2419_v31  ;;  %v1014_v13 = vadd.f32 %v1006_v21, %v2426_v15  ;;  %v1029_v31 = vrot.slane %v2521_v19, 6 }
 0x402   :  { %v956_v9 = vpop.f32.mrf.mxu0  ;;  %v997_v5 = vpop.f32.mrf.mxu1 }
 0x403   :  { %2052 = vtanh.f32 %v1015_v7  ;;  %v1019_v17 = vmul.f32 0.5, %v1012_v11  ;;  %v1024_v25 = vmul.f32 0.5, %v1014_v13 }
 0x405   :  { %2054 = vtanh.f32 %v1019_v17 }
 0x406   :  { %2056 = vtanh.f32 %v1013_v20 }
 0x407   :  { %2058 = vtanh.f32 %v1024_v25 }
 0x410   :  { %v2053_v28 = vpop.eup %2052 }
 0x411   :  { %v1017_v29 = vmul.f32 0.5, %v2053_v28 }
 0x412   :  { %v2055_v12 = vpop.eup %2054 }
 0x413   :  { %v1018_v34 = vadd.f32 0.5, %v1017_v29  ;;  %v1021_v32 = vmul.f32 0.5, %v2055_v12  ;;  %v2057_v33 = vpop.eup %2056 }
 0x414   :  { %v2059_v8 = vpop.eup %2058 }
 0x415   :  { %v1022_v14 = vadd.f32 0.5, %v1021_v32  ;;  %v1032_v30 = vmul.f32 %v2057_v33, %v1018_v34  ;;  %v1026_v37 = vmul.f32 0.5, %v2059_v8 }
 0x417   :  { %v1031_v18 = vmul.f32 %v1029_v31, %v1022_v14  ;;  %v1027_v15 = vadd.f32 0.5, %v1026_v37 }
 0x419   :  { %v2569_v6 = vadd.f32 %v1032_v30, %v1031_v18 }
 0x41b   :  { %2060 = vtanh.f32 %v2569_v6  ;;  %v1140_v12 = vrot.slane %v2569_v6, 6  ;;  %v2625_v6 = vld [vmem:[#allocation4 + $0xe8] ss:$16 sps:$4 sm:$0xff]  }
 0x428   :  { %v2061_v16 = vpop.eup %2060 }
 0x429   :  { %v1035_v7 = vmul.f32 %v2061_v16, %v1027_v15  ;;  %v2622_v16 = vld [vmem:[#allocation4 + $0xe0] ss:$16 sps:$4 sm:$0xff]  }
 0x42b   :  { %v1036_v10 = vpack.c.bf16 %v1035_v7, %v1035_v7  ;;  %v2574_v11 = vsel %vm1517_vm2, %v2528_v24, %v1035_v7  ;;  %v2628_v7 = vld [vmem:[#allocation4 + $0xc4] ss:$16 sps:$4 sm:$0xff]  }
 0x42d   :  { %v1038_v9 = vrot.slane %v1036_v10, 3  ;;  %v2631_v10 = vld [vmem:[#allocation4 + $0xcc] ss:$16 sps:$4 sm:$0xff]  }
 0x42f   :  { %1073 = vmatmul.mubr.bf16.vlgmr.msra.gmra.mxu0 %v1038_v9  ;;  %1114 = vmatmul.mubr.bf16.vlgmr.msra.gmra.mxu1 %v1038_v9  ;;  %v2636_v9 = vld [vmem:[#allocation4 + $0xc0] ss:$16 sps:$4 sm:$0xff]  }
 0x430   :  { %1149 = vmatpush1.bf16.msra.mxu0 %v2274_v38  ;;  %1190 = vmatpush1.bf16.msra.mxu1 %v2276_v39 }
 0x431   :  { %1150 = vmatprep.subr.bf16.mxu0 %v2278_v40  ;;  %1191 = vmatprep.subr.bf16.mxu1 %v2282_v41 }
 0x432   :  { %1180 = vmatprep.mubr.bf16.mxu0 %v2205_v0  ;;  %1221 = vmatprep.mubr.bf16.mxu1 %v2205_v0 }
 0x434   :  { %1151 = vmatpush1.bf16.msra.mxu0 %v2284_v42  ;;  %1192 = vmatpush1.bf16.msra.mxu1 %v2288_v43 }
 0x435   :  { %1152 = vmatprep.subr.bf16.mxu0 %v2292_v44  ;;  %1193 = vmatprep.subr.bf16.mxu1 %v2294_v45 }
 0x438   :  { %1153 = vmatpush1.bf16.msra.mxu0 %v2298_v46  ;;  %1194 = vmatpush1.bf16.msra.mxu1 %v2302_v47 }
 0x439   :  { %1154 = vmatprep.subr.bf16.mxu0 %v2304_v48  ;;  %1195 = vmatprep.subr.bf16.mxu1 %v2308_v49 }
 0x43c   :  { %1155 = vmatpush1.bf16.msra.mxu0 %v2310_v50  ;;  %1196 = vmatpush1.bf16.msra.mxu1 %v2312_v51 }
 0x43d   :  { %1156 = vmatprep.subr.bf16.mxu0 %v2314_v52  ;;  %1197 = vmatprep.subr.bf16.mxu1 %v2316_v53 }
 0x440   :  { %1157 = vmatpush1.bf16.msra.mxu0 %v2322_v54  ;;  %1198 = vmatpush1.bf16.msra.mxu1 %v2324_v55 }
 0x441   :  { %1158 = vmatprep.subr.bf16.mxu0 %v2326_v56  ;;  %1199 = vmatprep.subr.bf16.mxu1 %v2328_v57 }
 0x444   :  { %1159 = vmatpush1.bf16.msra.mxu0 %v2334_v58  ;;  %1200 = vmatpush1.bf16.msra.mxu1 %v2336_v59 }
 0x445   :  { %1160 = vmatprep.subr.bf16.mxu0 %v2338_v60  ;;  %1201 = vmatprep.subr.bf16.mxu1 %v2340_v61 }
 0x448   :  { %1161 = vmatpush1.bf16.msra.mxu0 %v2348_v62  ;;  %1202 = vmatpush1.bf16.msra.mxu1 %v2350_v63 }
 0x449   :  { %1162 = vmatprep.subr.bf16.mxu0 %v2354_v1  ;;  %1203 = vmatprep.subr.bf16.mxu1 %v2356_v2 }
 0x44c   :  { %1163 = vmatpush1.bf16.msra.mxu0 %v2360_v3  ;;  %1204 = vmatpush1.bf16.msra.mxu1 %v2362_v4 }
 0x44d   :  { %1271 = vmatprep.subr.bf16.mxu0 %v2270_v35  ;;  %1312 = vmatprep.subr.bf16.mxu1 %v2272_v36 }
 0x4ef   :  { %v1074_v38 = vpop.f32.mrf.mxu0  ;;  %v1115_v39 = vpop.f32.mrf.mxu1 }
 0x4f0   :  { %v1122_v40 = vadd.f32 %v1074_v38, %v2409_v22  ;;  %v1124_v17 = vadd.f32 %v1115_v39, %v2411_v23  ;;  %v2639_v38 = vld [vmem:[#allocation4 + $0xc8] ss:$16 sps:$4 sm:$0xff]   ;;  %v2642_v39 = vld [vmem:[#allocation4 + $0xa4] ss:$16 sps:$4 sm:$0xff]  }
 0x4f1   :  { %v1076_v41 = vpop.f32.mrf.mxu0  ;;  %v1117_v42 = vpop.f32.mrf.mxu1 }
 0x4f2   :  { %v1126_v43 = vmul.f32 0.5, %v1122_v40  ;;  %v1123_v44 = vadd.f32 %v1076_v41, %v2413_v26  ;;  %v1125_v35 = vadd.f32 %v1117_v42, %v2415_v27  ;;  %v2645_v40 = vld [vmem:[#allocation4 + $0xac] ss:$16 sps:$4 sm:$0xff]   ;;  %v2648_v41 = vld [vmem:[#allocation4 + $0xa0] ss:$16 sps:$4 sm:$0xff]  }
 0x4f3   :  { %v1078_v45 = vpop.f32.mrf.mxu0  ;;  %v1119_v46 = vpop.f32.mrf.mxu1 }
 0x4f4   :  { %2062 = vtanh.f32 %v1126_v43  ;;  %v1130_v19 = vmul.f32 0.5, %v1123_v44  ;;  %v1135_v36 = vmul.f32 0.5, %v1125_v35 }
 0x4f5   :  { %v1079_v24 = vpop.f32.mrf.mxu0  ;;  %v1120_v5 = vpop.f32.mrf.mxu1 }
 0x4f6   :  { %2064 = vtanh.f32 %v1130_v19 }
 0x4f7   :  { %2066 = vtanh.f32 %v1124_v17 }
 0x4f8   :  { %2068 = vtanh.f32 %v1135_v36 }
 0x501   :  { %v2063_v20 = vpop.eup %2062 }
 0x502   :  { %v1128_v21 = vmul.f32 0.5, %v2063_v20 }
 0x503   :  { %v2065_v13 = vpop.eup %2064 }
 0x504   :  { %v1129_v25 = vadd.f32 0.5, %v1128_v21  ;;  %v1132_v28 = vmul.f32 0.5, %v2065_v13  ;;  %v2067_v34 = vpop.eup %2066 }
 0x505   :  { %v2069_v33 = vpop.eup %2068 }
 0x506   :  { %v1133_v29 = vadd.f32 0.5, %v1132_v28  ;;  %v1143_v14 = vmul.f32 %v2067_v34, %v1129_v25  ;;  %v1137_v18 = vmul.f32 0.5, %v2069_v33  ;;  %v2113_v34 = vld [vmem:[#allocation4 + $0xa8] ss:$16 sps:$4 sm:$0xff]  }
 0x507   :  { %v2117_v33 = vld [vmem:[#allocation4 + $0x88] ss:$16 sps:$4 sm:$0xff]  }
 0x508   :  { %v1142_v32 = vmul.f32 %v1140_v12, %v1133_v29  ;;  %v1138_v30 = vadd.f32 0.5, %v1137_v18  ;;  %v2119_v18 = vld [vmem:[#allocation4 + $0x6c] ss:$16 sps:$4 sm:$0xff]  }
 0x50a   :  { %v2615_v31 = vadd.f32 %v1143_v14, %v1142_v32  ;;  %v2114_v32 = vld [vmem:[#allocation4 + $0x84] ss:$16 sps:$4 sm:$0xff]   ;;  %v2115_v14 = vld [vmem:[#allocation4 + $0x8c] ss:$16 sps:$4 sm:$0xff]  }
 0x50c   :  { %2070 = vtanh.f32 %v2615_v31  ;;  %v1260_v24 = vrot.slane %v2615_v31, 6  ;;  %v2116_v31 = vld [vmem:[#allocation4 + $0x80] ss:$16 sps:$4 sm:$0xff]  }
 0x519   :  { %v2071_v8 = vpop.eup %2070 }
 0x51a   :  { %v2618_v37 = vmul.f32 %v2071_v8, %v1138_v30  ;;  %v2120_v30 = vld [vmem:[#allocation4 + $0x60] ss:$16 sps:$4 sm:$0xff]   ;;  %v2121_v8 = vld [vmem:[#allocation4 + $0x68] ss:$16 sps:$4 sm:$0xff]  }
 0x51c   :  { %v1147_v15 = vpack.c.bf16 %v2618_v37, %v2618_v37 }
 0x51e   :  { %1181 = vmatmul.mubr.bf16.vlgmr.msra.gmra.mxu0 %v1147_v15  ;;  %1222 = vmatmul.mubr.bf16.vlgmr.msra.gmra.mxu1 %v1147_v15  ;;  %v2122_v15 = vld [vmem:[#allocation4 + $0x44] ss:$16 sps:$4 sm:$0xff]  }
 0x51f   :  { %1272 = vmatpush1.bf16.msra.mxu0 %v2622_v16  ;;  %1313 = vmatpush1.bf16.msra.mxu1 %v2625_v6 }
 0x520   :  { %1273 = vmatprep.subr.bf16.mxu0 %v2628_v7  ;;  %1314 = vmatprep.subr.bf16.mxu1 %v2631_v10 }
 0x521   :  { %1303 = vmatprep.mubr.bf16.mxu0 %v2205_v0  ;;  %1344 = vmatprep.mubr.bf16.mxu1 %v2205_v0 }
 0x523   :  { %1274 = vmatpush1.bf16.msra.mxu0 %v2636_v9  ;;  %1315 = vmatpush1.bf16.msra.mxu1 %v2639_v38 }
 0x524   :  { %1275 = vmatprep.subr.bf16.mxu0 %v2642_v39  ;;  %1316 = vmatprep.subr.bf16.mxu1 %v2645_v40 }
 0x527   :  { %1276 = vmatpush1.bf16.msra.mxu0 %v2648_v41  ;;  %1317 = vmatpush1.bf16.msra.mxu1 %v2302_v47  ;;  %v2111_v47 = vld [vmem:[#allocation4 + $0xe4] ss:$16 sps:$4 sm:$0xff]  }
 0x528   :  { %1277 = vmatprep.subr.bf16.mxu0 %v2304_v48  ;;  %1318 = vmatprep.subr.bf16.mxu1 %v2308_v49  ;;  %v2112_v48 = vld [vmem:[#allocation4 + $0xec] ss:$16 sps:$4 sm:$0xff]  }
 0x52b   :  { %1278 = vmatpush1.bf16.msra.mxu0 %v2310_v50  ;;  %1319 = vmatpush1.bf16.msra.mxu1 %v2312_v51 }
 0x52c   :  { %1279 = vmatprep.subr.bf16.mxu0 %v2314_v52  ;;  %1320 = vmatprep.subr.bf16.mxu1 %v2316_v53 }
 0x52f   :  { %1280 = vmatpush1.bf16.msra.mxu0 %v2322_v54  ;;  %1321 = vmatpush1.bf16.msra.mxu1 %v2324_v55 }
 0x530   :  { %1281 = vmatprep.subr.bf16.mxu0 %v2326_v56  ;;  %1322 = vmatprep.subr.bf16.mxu1 %v2328_v57 }
 0x533   :  { %1282 = vmatpush1.bf16.msra.mxu0 %v2334_v58  ;;  %1323 = vmatpush1.bf16.msra.mxu1 %v2336_v59 }
 0x534   :  { %1283 = vmatprep.subr.bf16.mxu0 %v2338_v60  ;;  %1324 = vmatprep.subr.bf16.mxu1 %v2340_v61 }
 0x537   :  { %1284 = vmatpush1.bf16.msra.mxu0 %v2348_v62  ;;  %1325 = vmatpush1.bf16.msra.mxu1 %v2350_v63 }
 0x538   :  { %1285 = vmatprep.subr.bf16.mxu0 %v2354_v1  ;;  %1326 = vmatprep.subr.bf16.mxu1 %v2356_v2 }
 0x53b   :  { %1286 = vmatpush1.bf16.msra.mxu0 %v2360_v3  ;;  %1327 = vmatpush1.bf16.msra.mxu1 %v2362_v4 }
 0x53c   :  { %1394 = vmatprep.subr.bf16.mxu0 %v2111_v47  ;;  %1435 = vmatprep.subr.bf16.mxu1 %v2112_v48  ;;  %v2132_v47 = vld [vmem:[#allocation4] ss:$16 sps:$4 sm:$0xff]   ;;  %v2133_v48 = vld [vmem:[#allocation4 + $0x8] ss:$16 sps:$4 sm:$0xff]  }
 0x5de   :  { %v1182_v49 = vpop.f32.mrf.mxu0  ;;  %v1223_v50 = vpop.f32.mrf.mxu1 }
 0x5df   :  { %v1234_v51 = vrot.slane %v1182_v49, 6  ;;  %v1236_v59 = vrot.slane %v1223_v50, 6 }
 0x5e0   :  { %v1184_v52 = vpop.f32.mrf.mxu0  ;;  %v1225_v53 = vpop.f32.mrf.mxu1 }
 0x5e1   :  { %v1242_v54 = vadd.f32 %v1234_v51, %v2409_v22  ;;  %v1235_v55 = vrot.slane %v1184_v52, 6  ;;  %v1244_v1 = vadd.f32 %v1236_v59, %v2411_v23  ;;  %v1237_v2 = vrot.slane %v1225_v53, 6 }
 0x5e2   :  { %v1186_v56 = vpop.f32.mrf.mxu0  ;;  %v1227_v57 = vpop.f32.mrf.mxu1 }
 0x5e3   :  { %v1246_v58 = vmul.f32 0.5, %v1242_v54  ;;  %v1243_v60 = vadd.f32 %v1235_v55, %v2413_v26  ;;  %v1245_v3 = vadd.f32 %v1237_v2, %v2415_v27 }
 0x5e4   :  { %v1187_v61 = vpop.f32.mrf.mxu0  ;;  %v1228_v62 = vpop.f32.mrf.mxu1 }
 0x5e5   :  { %2072 = vtanh.f32 %v1246_v58  ;;  %v1250_v63 = vmul.f32 0.5, %v1243_v60  ;;  %v1255_v4 = vmul.f32 0.5, %v1245_v3 }
 0x5e7   :  { %2074 = vtanh.f32 %v1250_v63 }
 0x5e8   :  { %2076 = vtanh.f32 %v1244_v1 }
 0x5e9   :  { %2078 = vtanh.f32 %v1255_v4 }
 0x5f2   :  { %v2073_v42 = vpop.eup %2072 }
 0x5f3   :  { %v1248_v43 = vmul.f32 0.5, %v2073_v42 }
 0x5f4   :  { %v2075_v44 = vpop.eup %2074 }
 0x5f5   :  { %v1249_v45 = vadd.f32 0.5, %v1248_v43  ;;  %v1252_v46 = vmul.f32 0.5, %v2075_v44  ;;  %v2077_v5 = vpop.eup %2076 }
 0x5f6   :  { %v2079_v20 = vpop.eup %2078 }
 0x5f7   :  { %v1253_v19 = vadd.f32 0.5, %v1252_v46  ;;  %v1263_v35 = vmul.f32 %v2077_v5, %v1249_v45  ;;  %v1257_v21 = vmul.f32 0.5, %v2079_v20 }
 0x5f9   :  { %v1262_v17 = vmul.f32 %v1260_v24, %v1253_v19  ;;  %v1258_v13 = vadd.f32 0.5, %v1257_v21 }
 0x5fb   :  { %v2677_v36 = vadd.f32 %v1263_v35, %v1262_v17 }
 0x5fd   :  { %2080 = vtanh.f32 %v2677_v36  ;;  %v1383_v24 = vrot.slane %v2677_v36, 6 }
 0x60a   :  { %v2081_v25 = vpop.eup %2080 }
 0x60b   :  { %v2680_v28 = vmul.f32 %v2081_v25, %v1258_v13 }
 0x60d   :  { %v1267_v29 = vpack.c.bf16 %v2680_v28, %v2680_v28 }
 0x60f   :  { %v1269_v12 = vrot.slane %v1267_v29, 1 }
 0x611   :  { %1304 = vmatmul.mubr.bf16.vlgmr.msra.gmra.mxu0 %v1269_v12  ;;  %1345 = vmatmul.mubr.bf16.vlgmr.msra.gmra.mxu1 %v1269_v12 }
 0x612   :  { %1395 = vmatpush1.bf16.msra.mxu0 %v2622_v16  ;;  %1436 = vmatpush1.bf16.msra.mxu1 %v2625_v6  ;;  %v2123_v16 = vld [vmem:[#allocation4 + $0x4c] ss:$16 sps:$4 sm:$0xff]   ;;  %v2124_v6 = vld [vmem:[#allocation4 + $0x40] ss:$16 sps:$4 sm:$0xff]  }
 0x613   :  { %1396 = vmatprep.subr.bf16.mxu0 %v2628_v7  ;;  %1437 = vmatprep.subr.bf16.mxu1 %v2631_v10  ;;  %v2125_v7 = vld [vmem:[#allocation4 + $0x48] ss:$16 sps:$4 sm:$0xff]   ;;  %v2126_v10 = vld [vmem:[#allocation4 + $0x24] ss:$16 sps:$4 sm:$0xff]  }
 0x614   :  { %1426 = vmatprep.mubr.bf16.mxu0 %v2205_v0  ;;  %1467 = vmatprep.mubr.bf16.mxu1 %v2205_v0  ;;  %v2118_v0 = vld [vmem:[#allocation4 + $0x64] ss:$16 sps:$4 sm:$0xff]  }
 0x616   :  { %1397 = vmatpush1.bf16.msra.mxu0 %v2636_v9  ;;  %1438 = vmatpush1.bf16.msra.mxu1 %v2639_v38  ;;  %v2127_v9 = vld [vmem:[#allocation4 + $0x2c] ss:$16 sps:$4 sm:$0xff]   ;;  %v2128_v38 = vld [vmem:[#allocation4 + $0x20] ss:$16 sps:$4 sm:$0xff]  }
 0x617   :  { %1398 = vmatprep.subr.bf16.mxu0 %v2642_v39  ;;  %1439 = vmatprep.subr.bf16.mxu1 %v2645_v40  ;;  %v2129_v39 = vld [vmem:[#allocation4 + $0x28] ss:$16 sps:$4 sm:$0xff]   ;;  %v2130_v40 = vld [vmem:[#allocation4 + $0x4] ss:$16 sps:$4 sm:$0xff]  }
 0x61a   :  { %1399 = vmatpush1.bf16.msra.mxu0 %v2648_v41  ;;  %1440 = vmatpush1.bf16.msra.mxu1 %v2113_v34  ;;  %v2131_v41 = vld [vmem:[#allocation4 + $0xc] ss:$16 sps:$4 sm:$0xff]   ;;  %v1519_v34 = vsel %vm1513_vm0, %v2618_v37, %v2680_v28  ;;  %v2007_v37 = vld [vmem:[%s2775_s4 + $0x30] sm:$0xff]  }
 0x61b   :  { %1400 = vmatprep.subr.bf16.mxu0 %v2114_v32  ;;  %1441 = vmatprep.subr.bf16.mxu1 %v2115_v14  ;;  %v2008_v28 = vld [vmem:[%s2775_s4 + $0x28] sm:$0xff]  }
 0x61e   :  { %1401 = vmatpush1.bf16.msra.mxu0 %v2116_v31  ;;  %1442 = vmatpush1.bf16.msra.mxu1 %v2117_v33  ;;  %v2006_v31 = vld [vmem:[%s2775_s4 + $0x38] sm:$0xff]   ;;  %v2206_v33 = vmov 0.0  }
 0x61f   :  { %1402 = vmatprep.subr.bf16.mxu0 %v2118_v0  ;;  %1443 = vmatprep.subr.bf16.mxu1 %v2119_v18  ;;  %v2009_v0 = vld [vmem:[%s2775_s4 + $0x20] sm:$0xff]   ;;  %v2010_v18 = vld [vmem:[%s2775_s4 + $0x18] sm:$0xff]  }
 0x622   :  { %1403 = vmatpush1.bf16.msra.mxu0 %v2120_v30  ;;  %1444 = vmatpush1.bf16.msra.mxu1 %v2121_v8  ;;  %v2011_v30 = vld [vmem:[%s2775_s4 + $0x10] sm:$0xff]   ;;  %v2012_v8 = vld [vmem:[%s2775_s4 + $0x8] sm:$0xff]  }
 0x623   :  { %1404 = vmatprep.subr.bf16.mxu0 %v2122_v15  ;;  %1445 = vmatprep.subr.bf16.mxu1 %v2123_v16  ;;  %v2013_v15 = vld [vmem:[%s2775_s4] sm:$0xff]   ;;  %v2014_v16 = vld [vmem:[#allocation6 + $0x38] sm:$0xff]  }
 0x626   :  { %1405 = vmatpush1.bf16.msra.mxu0 %v2124_v6  ;;  %1446 = vmatpush1.bf16.msra.mxu1 %v2125_v7  ;;  %v2015_v6 = vld [vmem:[#allocation6 + $0x30] sm:$0xff]   ;;  %v2016_v7 = vld [vmem:[#allocation6 + $0x28] sm:$0xff]  }
 0x627   :  { %1406 = vmatprep.subr.bf16.mxu0 %v2126_v10  ;;  %1447 = vmatprep.subr.bf16.mxu1 %v2127_v9  ;;  %v2017_v10 = vld [vmem:[#allocation6 + $0x20] sm:$0xff]   ;;  %v2018_v9 = vld [vmem:[#allocation6 + $0x18] sm:$0xff]  }
 0x62a   :  { %1407 = vmatpush1.bf16.msra.mxu0 %v2128_v38  ;;  %1448 = vmatpush1.bf16.msra.mxu1 %v2129_v39 }
 0x62b   :  { %1408 = vmatprep.subr.bf16.mxu0 %v2130_v40  ;;  %1449 = vmatprep.subr.bf16.mxu1 %v2131_v41 }
 0x62e   :  { %1409 = vmatpush1.bf16.msra.mxu0 %v2132_v47  ;;  %1450 = vmatpush1.bf16.msra.mxu1 %v2133_v48 }
 0x62f   :  { %1860 = vmatprep.subr.bf16.mxu0 %v2206_v33  ;;  %1880 = vmatprep.subr.bf16.mxu1 %v2206_v33 }
 0x6d1   :  { %v1305_v49 = vpop.f32.mrf.mxu0  ;;  %v1346_v50 = vpop.f32.mrf.mxu1 }
 0x6d2   :  { %v1357_v51 = vrot.slane %v1305_v49, 4  ;;  %v1359_v59 = vrot.slane %v1346_v50, 4 }
 0x6d3   :  { %v1307_v52 = vpop.f32.mrf.mxu0  ;;  %v1348_v53 = vpop.f32.mrf.mxu1 }
 0x6d4   :  { %v1365_v54 = vadd.f32 %v1357_v51, %v2409_v22  ;;  %v1358_v55 = vrot.slane %v1307_v52, 4  ;;  %v1367_v1 = vadd.f32 %v1359_v59, %v2411_v23  ;;  %v1360_v2 = vrot.slane %v1348_v53, 4 }
 0x6d5   :  { %v1309_v56 = vpop.f32.mrf.mxu0  ;;  %v1350_v57 = vpop.f32.mrf.mxu1 }
 0x6d6   :  { %v1369_v58 = vmul.f32 0.5, %v1365_v54  ;;  %v1366_v60 = vadd.f32 %v1358_v55, %v2413_v26  ;;  %v1368_v3 = vadd.f32 %v1360_v2, %v2415_v27 }
 0x6d7   :  { %v1310_v61 = vpop.f32.mrf.mxu0  ;;  %v1351_v62 = vpop.f32.mrf.mxu1 }
 0x6d8   :  { %2082 = vtanh.f32 %v1369_v58  ;;  %v1373_v63 = vmul.f32 0.5, %v1366_v60  ;;  %v1378_v4 = vmul.f32 0.5, %v1368_v3 }
 0x6da   :  { %2084 = vtanh.f32 %v1373_v63 }
 0x6db   :  { %2086 = vtanh.f32 %v1367_v1 }
 0x6dc   :  { %2088 = vtanh.f32 %v1378_v4 }
 0x6e5   :  { %v2083_v42 = vpop.eup %2082 }
 0x6e6   :  { %v1371_v43 = vmul.f32 0.5, %v2083_v42 }
 0x6e7   :  { %v2085_v44 = vpop.eup %2084 }
 0x6e8   :  { %v1372_v45 = vadd.f32 0.5, %v1371_v43  ;;  %v1375_v46 = vmul.f32 0.5, %v2085_v44  ;;  %v2087_v5 = vpop.eup %2086 }
 0x6e9   :  { %v2089_v21 = vpop.eup %2088 }
 0x6ea   :  { %v1376_v19 = vadd.f32 0.5, %v1375_v46  ;;  %v1386_v35 = vmul.f32 %v2087_v5, %v1372_v45  ;;  %v1380_v13 = vmul.f32 0.5, %v2089_v21  ;;  %v1522_v5 = vmax.f32 %v2574_v11, 0.0  ;;  %v2019_v21 = vld [vmem:[#allocation6 + $0x10] sm:$0xff]  }
 0x6ec   :  { %v1385_v17 = vmul.f32 %v1383_v24, %v1376_v19  ;;  %v1381_v25 = vadd.f32 0.5, %v1380_v13  ;;  %v2021_v13 = vld [vmem:[#allocation6] sm:$0xff]  }
 0x6ee   :  { %v2700_v20 = vadd.f32 %v1386_v35, %v1385_v17 }
 0x6f0   :  { %2090 = vtanh.f32 %v2700_v20 }
 0x6fd   :  { %v2091_v29 = vpop.eup %2090 }
 0x6fe   :  { %v1389_v12 = vmul.f32 %v2091_v29, %v1381_v25  ;;  %v1824_v25 = vld [vmem:[%s2776_s5] ss:$0 sm:$0xff] }
 0x700   :  { %v1390_v32 = vpack.c.bf16 %v1389_v12, %v1389_v12  ;;  %v2707_v14 = vsel %vm1515_vm1, %v1519_v34, %v1389_v12 }
 0x702   :  { %v1392_v36 = vrot.slane %v1390_v32, 2 }
 0x704   :  { %1427 = vmatmul.mubr.bf16.vlgmr.msra.gmra.mxu0 %v1392_v36  ;;  %1468 = vmatmul.mubr.bf16.vlgmr.msra.gmra.mxu1 %v1392_v36 }
 0x705   :  { %1861 = vmatpush3.bf16.msra.mxu0 %v2006_v31  ;;  %1876 = vmatprep.mubr.msk.bf16.mxu0 %vm2207_vm3, %v2206_v33 }
 0x706   :  { %1862 = vmatprep.subr.bf16.mxu0 %v2206_v33  ;;  %1896 = vmatprep.mubr.msk.bf16.mxu1 %vm2207_vm3, %v2206_v33 }
 0x707   :  { %1881 = vmatpush3.bf16.msra.mxu1 %v2014_v16 }
 0x708   :  { %1882 = vmatprep.subr.bf16.mxu1 %v2206_v33 }
 0x709   :  { %1863 = vmatpush3.bf16.msra.mxu0 %v2007_v37 }
 0x70a   :  { %1864 = vmatprep.subr.bf16.mxu0 %v2206_v33 }
 0x70b   :  { %1883 = vmatpush3.bf16.msra.mxu1 %v2015_v6 }
 0x70c   :  { %1884 = vmatprep.subr.bf16.mxu1 %v2206_v33 }
 0x70d   :  { %1865 = vmatpush3.bf16.msra.mxu0 %v2008_v28 }
 0x70e   :  { %1866 = vmatprep.subr.bf16.mxu0 %v2206_v33 }
 0x70f   :  { %1885 = vmatpush3.bf16.msra.mxu1 %v2016_v7 }
 0x710   :  { %1886 = vmatprep.subr.bf16.mxu1 %v2206_v33 }
 0x711   :  { %1867 = vmatpush3.bf16.msra.mxu0 %v2009_v0 }
 0x712   :  { %1868 = vmatprep.subr.bf16.mxu0 %v2206_v33 }
 0x713   :  { %1887 = vmatpush3.bf16.msra.mxu1 %v2017_v10 }
 0x714   :  { %1888 = vmatprep.subr.bf16.mxu1 %v2206_v33 }
 0x715   :  { %1869 = vmatpush3.bf16.msra.mxu0 %v2010_v18 }
 0x716   :  { %1870 = vmatprep.subr.bf16.mxu0 %v2206_v33 }
 0x717   :  { %1889 = vmatpush3.bf16.msra.mxu1 %v2018_v9 }
 0x718   :  { %1890 = vmatprep.subr.bf16.mxu1 %v2206_v33 }
 0x719   :  { %1871 = vmatpush3.bf16.msra.mxu0 %v2011_v30 }
 0x71a   :  { %1872 = vmatprep.subr.bf16.mxu0 %v2206_v33 }
 0x71b   :  { %1891 = vmatpush3.bf16.msra.mxu1 %v2019_v21 }
 0x71c   :  { %1892 = vmatprep.subr.bf16.mxu1 %v2206_v33 }
 0x71d   :  { %1873 = vmatpush3.bf16.msra.mxu0 %v2012_v8 }
 0x71e   :  { %1874 = vmatprep.subr.bf16.mxu0 %v2206_v33 }
 0x721   :  { %1875 = vmatpush3.bf16.msra.mxu0 %v2013_v15 }
 0x7c4   :  { %v1428_v38 = vpop.f32.mrf.mxu0  ;;  %v1469_v39 = vpop.f32.mrf.mxu1 }
 0x7c5   :  { %v1480_v40 = vrot.slane %v1428_v38, 2  ;;  %v1482_v53 = vrot.slane %v1469_v39, 2 }
 0x7c6   :  { %v1430_v41 = vpop.f32.mrf.mxu0  ;;  %v1471_v47 = vpop.f32.mrf.mxu1 }
 0x7c7   :  { %v1488_v48 = vadd.f32 %v1480_v40, %v2409_v22  ;;  %v1481_v49 = vrot.slane %v1430_v41, 2  ;;  %v1490_v58 = vadd.f32 %v1482_v53, %v2411_v23  ;;  %v1483_v59 = vrot.slane %v1471_v47, 2 }
 0x7c8   :  { %v1432_v50 = vpop.f32.mrf.mxu0  ;;  %v1473_v51 = vpop.f32.mrf.mxu1 }
 0x7c9   :  { %v1492_v52 = vmul.f32 0.5, %v1488_v48  ;;  %v1489_v54 = vadd.f32 %v1481_v49, %v2413_v26  ;;  %v1491_v60 = vadd.f32 %v1483_v59, %v2415_v27  ;;  %v1506_v26 = vrot.slane %v2700_v20, 6  ;;  %v2020_v20 = vld [vmem:[#allocation6 + $0x8] sm:$0xff]  }
 0x7ca   :  { %v1433_v55 = vpop.f32.mrf.mxu0  ;;  %v1474_v56 = vpop.f32.mrf.mxu1  ;;  %1893 = vmatpush3.bf16.msra.mxu1 %v2020_v20 }
 0x7cb   :  { %2092 = vtanh.f32 %v1492_v52  ;;  %v1496_v57 = vmul.f32 0.5, %v1489_v54  ;;  %v1501_v61 = vmul.f32 0.5, %v1491_v60  ;;  %1894 = vmatprep.subr.bf16.mxu1 %v2206_v33  ;;  %v1833_v33 = vld [vmem:[%s2778_s7] ss:$0 sm:$0xff] }
 0x7cd   :  { %2094 = vtanh.f32 %v1496_v57 }
 0x7ce   :  { %2096 = vtanh.f32 %v1490_v58  ;;  %1895 = vmatpush3.bf16.msra.mxu1 %v2021_v13 }
 0x7cf   :  { %2098 = vtanh.f32 %v1501_v61 }
 0x7d8   :  { %v2093_v22 = vpop.eup %2092 }
 0x7d9   :  { %v1494_v62 = vmul.f32 0.5, %v2093_v22 }
 0x7da   :  { %v2095_v63 = vpop.eup %2094 }
 0x7db   :  { %v1495_v1 = vadd.f32 0.5, %v1494_v62  ;;  %v1498_v2 = vmul.f32 0.5, %v2095_v63  ;;  %v2097_v4 = vpop.eup %2096 }
 0x7dc   :  { %v2099_v23 = vpop.eup %2098 }
 0x7dd   :  { %v1499_v3 = vadd.f32 0.5, %v1498_v2  ;;  %v1509_v43 = vmul.f32 %v2097_v4, %v1495_v1  ;;  %v1503_v45 = vmul.f32 0.5, %v2099_v23 }
 0x7df   :  { %v1508_v42 = vmul.f32 %v1506_v26, %v1499_v3  ;;  %v1504_v46 = vadd.f32 0.5, %v1503_v45 }
 0x7e1   :  { %v1510_v44 = vadd.f32 %v1509_v43, %v1508_v42 }
 0x7e3   :  { %2100 = vtanh.f32 %v1510_v44 }
 0x7f0   :  { %v2101_v19 = vpop.eup %2100 }
 0x7f1   :  { %v1512_v27 = vmul.f32 %v2101_v19, %v1504_v46 }
 0x7f3   :  { %v1521_v24 = vsel %vm1517_vm2, %v2707_v14, %v1512_v27 }
 0x7f4   :  { %v1523_v17 = vmax.f32 %v1521_v24, 0.0 }
 0x7f6   :  { %v1524_v35 = vpack.c.bf16 %v1523_v17, %v1522_v5 }
 0x7f8   :  { %1877 = vmatmul.mubr.bf16.vlgmr.msra.gmra.mxu0 %v1524_v35 }
 0x8b8   :  { %v1630_v29 = vpop.f32.mrf.mxu0 }
 0x8b9   :  { %v1631_v11 = vadd.f32 %v1824_v25, %v1630_v29 }
 0x8ba   :  { %v1878_v12 = vpop.f32.mrf.mxu0 }
 0x8bb   :  { %v1637_v36 = vmax.f32 %v1631_v11, 0.0 }
 0x8bc   :  { %v1633_v34 = vpop.f32.mrf.mxu0 }
 0x8bd   :  { %v1634_v32 = vadd.f32 %v1824_v25, %v1633_v34 }
 0x8be   :  { %v1879_v14 = vpop.f32.mrf.mxu0 }
 0x8bf   :  { %v1638_v31 = vmax.f32 %v1634_v32, 0.0 }
 0x8c1   :  { %v1639_v37 = vpack.c.bf16 %v1638_v31, %v1637_v36 }
 0x8c3   :  { %1897 = vmatmul.mubr.bf16.vlgmr.msra.gmra.mxu1 %v1639_v37 }
 0x983   :  { %v1745_v28 = vpop.f32.mrf.mxu1 }
 0x984   :  { %v1746_v0 = vadd.f32 %v1833_v33, %v1745_v28 }
 0x985   :  { %v1898_v18 = vpop.f32.mrf.mxu1 }
 0x986   :  { %1752 = vst [vmem:[%s2779_s8] sm:$0xff] %v1746_v0 }
 0x987   :  { %v1748_v30 = vpop.f32.mrf.mxu1 }
 0x988   :  { %v1749_v8 = vadd.f32 %v1833_v33, %v1748_v30 }
 0x989   :  { %v1899_v15 = vpop.f32.mrf.mxu1 }
 0x98a   :  { %1753 = vst [vmem:[%s2779_s8 + $0x8] sm:$0xff] %v1749_v8 }
 0x98b   :  { %1758 = vsyncpa [#allocation3], 1 }
 0x98c   :  { %1759 = vsyncpa [#allocation5], 1 }

</bundles_post_ra>
